<compile_context>
chip_gen: v7x
topology: tpu7x:2x2x1
jax: 0.10.0
libtpu: 0.0.40
codegen_flags: <defaults>
</compile_context>

<pallas_src>
import jax
import jax.numpy as jnp
import numpy as np
from jax.experimental import pallas as pl
from jax.experimental.pallas import tpu as pltpu


# -----------------------------------------------------------------------------
# Kernel
# -----------------------------------------------------------------------------
def policy_head_kernel(
    x_ref,          # (b_tile, Cin, HW)        input dtype (cast in-kernel)
    wpg_ref,        # (2C, Cin)                matmul dtype, BN scales folded
    bpg_ref,        # (2C, 1)  f32             BN shifts folded
    ws_ref,         # (3C, C+2) matmul dtype   [fc_bias*bnp_scale | pass_fc]
    bs_ref,         # (1, C+2) f32
    wfin_blk_ref,   # (2*b_tile, b_tile*C)     block-diagonal final conv
    bfin_ref,       # (2, 1)   f32
    out_ref,        # (2, b_tile, HW_pad) f32
):
    b_tile, cin, hw = x_ref.shape
    two_c = wpg_ref.shape[0]
    c = two_c // 2
    mm_dtype = wpg_ref.dtype

    # --- 1x1 convs (conv_p | conv_g fused; bn_g / bn_p scales folded offline) --
    x = x_ref[...].astype(mm_dtype)                             # (b, Cin, HW)
    wpg_b = jnp.broadcast_to(wpg_ref[...], (b_tile, two_c, cin))
    pg = jnp.einsum("bdc,bch->bdh", wpg_b, x,
                    preferred_element_type=jnp.float32)         # (b, 2C, HW)
    pg = pg + bpg_ref[...]                                      # (2C,1) bcast
    p = pg[:, :c, :]                                            # sublane slice
    g = jnp.maximum(pg[:, c:, :], 0.0)                          # bn_g folded

    # --- global pooling per image over HW lanes; two-pass (centered) std -----
    inv_hw = 1.0 / float(hw)
    inv_den = 1.0 / float(max(hw - 1, 1))                       # torch.std (unbiased)
    g_mean_k = jnp.sum(g, axis=-1, keepdims=True) * inv_hw      # (b, C, 1)
    g_ctr = g - g_mean_k
    g_var = jnp.sum(g_ctr * g_ctr, axis=-1) * inv_den           # (b, C)
    g_std = jnp.sqrt(g_var)
    g_mean = jnp.sum(g, axis=-1) * inv_hw                       # (b, C)
    g_max = jnp.max(g, axis=-1)                                 # (b, C)
    stats = jnp.concatenate([g_mean, g_max, g_std], axis=-1)    # (b, 3C)

    # --- fc_bias + pass_logit_fc: one matmul (bnp_scale folded into cb cols) --
    so = jnp.dot(stats.astype(mm_dtype), ws_ref[...],
                 preferred_element_type=jnp.float32) + bs_ref[...]   # (b, C+2)
    cb = so[:, :c]                                              # (b, C)
    pass_logits = so[:, c:c + 2]                                # (b, 2)

    # --- bn_p folded -> bias + relu; final conv as ONE block-diagonal matmul --
    p_act = jnp.maximum(p + cb[:, :, None], 0.0)                # (b, C, HW)
    p2d = p_act.reshape(b_tile * c, hw).astype(mm_dtype)        # free reshape
    sp = jnp.dot(wfin_blk_ref[...], p2d,
                 preferred_element_type=jnp.float32)            # (2*b, HW)
    sp = sp.reshape(2, b_tile, hw) + bfin_ref[...][:, :, None]  # (2, b, HW)

    # --- pack: spatial logits at lanes [0, HW), pass logit at lane HW. -------
    # Pad lanes [HW+1, HW_pad) are never read by the wrapper, so they stay
    # unwritten (no lane-offset concat, no XLU shifts).
    out_ref[:, :, :hw] = sp
    out_ref[0, :, hw:hw + 1] = pass_logits[:, 0:1]
    out_ref[1, :, hw:hw + 1] = pass_logits[:, 1:2]


# -----------------------------------------------------------------------------
# Parameters (PyTorch layout) + offline folding into kernel layout
# -----------------------------------------------------------------------------
def make_params(key, num_hidden, channels):
    """Deterministic synthetic parameters matching PolicyHead.__init__ shapes."""
    Cin, C = num_hidden, channels
    keys = jax.random.split(key, 20)
    k = iter(keys)

    def rnd(shape, scale=0.1):
        return (scale * jax.random.normal(next(k), shape)).astype(jnp.float32)

    eps = 1e-5
    params = {}
    # conv_p / conv_g: PyTorch weight is (C_out, C_in, 1, 1); stored as (C_in, C_out).
    params["wp"] = rnd((Cin, C))
    params["bp"] = rnd((1, C))
    params["wg"] = rnd((Cin, C))
    params["bg"] = rnd((1, C))

    # bn_g (inference mode): fold (gamma, beta, running stats, eps) into scale/shift.
    g_gamma = 1.0 + rnd((1, C))
    g_beta = rnd((1, C))
    g_rmean = rnd((1, C))
    g_rvar = 1.0 + jnp.abs(rnd((1, C)))
    params["bng_scale"] = g_gamma / jnp.sqrt(g_rvar + eps)
    params["bng_shift"] = g_beta - g_rmean * params["bng_scale"]

    # fc_bias: Linear(3C -> C); weight (C, 3C) transposed -> (3C, C), split into
    # [mean | max | std] chunks along the pooled-feature axis.
    wfc_t = rnd((3 * C, C))
    params["wfc_mean"] = wfc_t[0:C]
    params["wfc_max"] = wfc_t[C:2 * C]
    params["wfc_std"] = wfc_t[2 * C:3 * C]
    params["bfc"] = rnd((1, C))

    # bn_p (inference mode).
    p_gamma = 1.0 + rnd((1, C))
    p_beta = rnd((1, C))
    p_rmean = rnd((1, C))
    p_rvar = 1.0 + jnp.abs(rnd((1, C)))
    params["bnp_scale"] = p_gamma / jnp.sqrt(p_rvar + eps)
    params["bnp_shift"] = p_beta - p_rmean * params["bnp_scale"]

    # final_conv: Conv2d(C -> 2, k=1); weight stored as (C, 2).
    params["wfin"] = rnd((C, 2))
    params["bfin"] = rnd((1, 2))

    # pass_logit_fc: Linear(3C -> 2); weight (2, 3C) transposed -> (3C, 2), split.
    wpass_t = rnd((3 * C, 2))
    params["wpass_mean"] = wpass_t[0:C]
    params["wpass_max"] = wpass_t[C:2 * C]
    params["wpass_std"] = wpass_t[2 * C:3 * C]
    params["bpass"] = rnd((1, 2))
    return params


def prepare_kernel_params(params, matmul_dtype=jnp.bfloat16):
    """Fold both BatchNorms into the weights and merge everything offline.

    bn_g: relu(bn_g(conv_g(x)))        -> relu(x @ (wg*s_g) + (bg*s_g + t_g))
    bn_p: relu(bn_p(conv_p(x) + cb))   -> relu(x @ (wp*s_p) + (bp*s_p + t_p)
                                               + stats @ (wfc*s_p) + bfc*s_p)
    """
    f32 = jnp.float32
    s_g, t_g = params["bng_scale"], params["bng_shift"]          # (1, C)
    s_p, t_p = params["bnp_scale"], params["bnp_shift"]          # (1, C)

    wp_f = params["wp"] * s_p                                    # (Cin, C)
    bp_f = params["bp"] * s_p + t_p                              # (1, C)
    wg_f = params["wg"] * s_g
    bg_f = params["bg"] * s_g + t_g

    kp = {}
    kp["wpg_t"] = jnp.concatenate([wp_f.T, wg_f.T], axis=0).astype(matmul_dtype)   # (2C, Cin)
    kp["bpg"] = jnp.concatenate([bp_f, bg_f], axis=1).T.astype(f32)                # (2C, 1)

    wfc = jnp.concatenate(
        [params["wfc_mean"], params["wfc_max"], params["wfc_std"]], axis=0)        # (3C, C)
    wpass = jnp.concatenate(
        [params["wpass_mean"], params["wpass_max"], params["wpass_std"]], axis=0)  # (3C, 2)
    kp["ws"] = jnp.concatenate([wfc * s_p, wpass], axis=1).astype(matmul_dtype)    # (3C, C+2)
    kp["bs"] = jnp.concatenate(
        [params["bfc"] * s_p, params["bpass"]], axis=1).astype(f32)                # (1, C+2)

    kp["wfin_t"] = params["wfin"].T.astype(matmul_dtype)                           # (2, C)
    kp["bfin"] = params["bfin"].T.astype(f32)                                      # (2, 1)
    return kp


# -----------------------------------------------------------------------------
# Wrapper
# -----------------------------------------------------------------------------
def _pick_b_tile(B, Cin, HW, HW_pad, x_itemsize, *, max_tile=32,
                 vmem_block_budget=12 * 1024 * 1024):
    """Largest batch tile that (a) divides B, (b) is a multiple of 8 (dense
    sublanes / (8,128) block constraint) or the whole batch, (c) fits the VMEM
    block budget (double-buffered in/out), (d) keeps grid >= 2 when possible
    (v7x: two TensorCores)."""
    def blocks_bytes(t):
        x_blk = t * Cin * HW * x_itemsize
        out_blk = 2 * t * HW_pad * 4
        return 2 * (x_blk + out_blk)

    divisors = [d for d in range(1, B + 1) if B % d == 0]
    ok = [d for d in divisors
          if (d % 8 == 0 or d == B) and d <= max_tile
          and blocks_bytes(d) <= vmem_block_budget]
    multi_step = [d for d in ok if B // d >= 2]
    if multi_step:
        return max(multi_step)
    if ok:
        return max(ok)
    return B  # degenerate fallback: one grid step over the whole batch


def policy_head_forward(x_nchw, kparams, *, b_tile=None):
    """x_nchw: (B, num_hidden, H, W). Returns (own_logits, opp_logits), each
    of shape (B, H*W + 1)."""
    B, Cin, H, W = x_nchw.shape
    HW = H * W
    HW_pad = ((HW + 1 + 127) // 128) * 128
    C = kparams["wfin_t"].shape[1]
    mm_dtype = kparams["wpg_t"].dtype

    if b_tile is None:
        b_tile = _pick_b_tile(B, Cin, HW, HW_pad, x_nchw.dtype.itemsize)
    assert B % b_tile == 0, "b_tile must divide the batch"
    assert b_tile % 8 == 0 or b_tile == B, \
        "b_tile must be a multiple of 8 (or the whole batch) for the dense output block"

    # Native NCHW consumption: a free reshape -- no transpose, no extra HBM pass.
    x3 = x_nchw.reshape(B, Cin, HW)

    # Final 1x1 conv as ONE block-diagonal matmul per grid step:
    # wfin_blk[d*b_tile + i, i*C + c] = wfin[c, d].
    eye = jnp.eye(b_tile, dtype=jnp.float32)
    wfin_blk = jnp.einsum("ij,dc->dijc", eye, kparams["wfin_t"].astype(jnp.float32))
    wfin_blk = wfin_blk.reshape(2 * b_tile, b_tile * C).astype(mm_dtype)

    param_arrays = [kparams["wpg_t"], kparams["bpg"], kparams["ws"],
                    kparams["bs"], wfin_blk, kparams["bfin"]]

    def const_spec(a):
        nd = a.ndim
        return pl.BlockSpec(a.shape, lambda bt, _nd=nd: (0,) * _nd)

    in_specs = [pl.BlockSpec((b_tile, Cin, HW), lambda bt: (bt, 0, 0))]
    in_specs += [const_spec(a) for a in param_arrays]

    # VMEM sizing: double-buffered x & out blocks + params, with headroom.
    x_blk = b_tile * Cin * HW * x_nchw.dtype.itemsize
    out_blk = 2 * b_tile * HW_pad * 4
    param_bytes = sum(int(np.prod(a.shape)) * a.dtype.itemsize for a in param_arrays)
    need = 2 * (x_blk + out_blk) + 2 * param_bytes + (2 << 20)
    vmem_limit = int(min(max(need, 16 << 20), 48 << 20))   # safe on v5e/v6e/v7x

    flops = int(2 * B * HW * Cin * (2 * C)        # conv_p | conv_g
                + 2 * B * (3 * C) * (C + 2)       # fc_bias | pass_logit_fc
                + 2 * B * HW * C * 2)             # final conv (useful flops)
    cost = pl.CostEstimate(
        flops=flops,
        transcendentals=int(B * C),
        bytes_accessed=int(B * Cin * HW * x_nchw.dtype.itemsize
                           + 2 * B * HW_pad * 4 + param_bytes))

    out = pl.pallas_call(
        policy_head_kernel,
        out_shape=jax.ShapeDtypeStruct((2, B, HW_pad), jnp.float32),
        grid=(B // b_tile,),
        in_specs=in_specs,
        out_specs=pl.BlockSpec((2, b_tile, HW_pad), lambda bt: (0, bt, 0)),
        compiler_params=pltpu.CompilerParams(
            dimension_semantics=("parallel",),
            vmem_limit_bytes=vmem_limit),
        cost_estimate=cost,
    )(x3, *param_arrays)

    # Contiguous slices: lanes [0, HW) are spatial logits, lane HW the pass logit.
    own_policy_logits = out[0, :, : HW + 1]
    opp_policy_logits = out[1, :, : HW + 1]
    return own_policy_logits, opp_policy_logits


# -----------------------------------------------------------------------------
# Pure-JAX reference (mirrors the PyTorch forward, BN in inference mode)
# -----------------------------------------------------------------------------
def policy_head_reference(x_nchw, params):
    B, Cin, H, W = x_nchw.shape
    HW = H * W
    x = jnp.transpose(x_nchw, (0, 2, 3, 1)).reshape(B, HW, Cin).astype(jnp.float32)

    p = jnp.einsum("bsc,cd->bsd", x, params["wp"]) + params["bp"]
    g = jnp.einsum("bsc,cd->bsd", x, params["wg"]) + params["bg"]
    g_proc = jnp.maximum(g * params["bng_scale"] + params["bng_shift"], 0.0)
    g_mean = jnp.mean(g_proc, axis=1)                                     # (B, C)
    g_max = jnp.max(g_proc, axis=1)
    g_std = jnp.sqrt(jnp.sum((g_proc - g_mean[:, None, :]) ** 2, axis=1) / (HW - 1))
    cb = (g_mean @ params["wfc_mean"] + g_max @ params["wfc_max"]
          + g_std @ params["wfc_std"] + params["bfc"])                    # (B, C)
    p_biased = p + cb[:, None, :]
    p_act = jnp.maximum(p_biased * params["bnp_scale"] + params["bnp_shift"], 0.0)
    p_out = jnp.einsum("bsc,cd->bsd", p_act, params["wfin"]) + params["bfin"]
    pass_logits = (g_mean @ params["wpass_mean"] + g_max @ params["wpass_max"]
                   + g_std @ params["wpass_std"] + params["bpass"])       # (B, 2)
    own = jnp.concatenate([p_out[:, :, 0], pass_logits[:, 0:1]], axis=1)
    opp = jnp.concatenate([p_out[:, :, 1], pass_logits[:, 1:2]], axis=1)
    return own, opp


if __name__ == "__main__":
    B, num_hidden, C, H, W = 16, 32, 16, 8, 8   # b_tile=8 -> grid=2 (v7x megacore)

    key = jax.random.PRNGKey(0)
    k_x, k_p = jax.random.split(key)
    x = jax.random.normal(k_x, (B, num_hidden, H, W), dtype=jnp.float32)
    params = make_params(k_p, num_hidden, C)

    own_ref, opp_ref = policy_head_reference(x, params)

    # 1) f32-matmul configuration: tight check against the pure-JAX reference.
    kparams_f32 = prepare_kernel_params(params, matmul_dtype=jnp.float32)
    own32, opp32 = policy_head_forward(x, kparams_f32)
    own32 = jax.block_until_ready(own32)
    opp32 = jax.block_until_ready(opp32)
    np.testing.assert_allclose(np.asarray(own32), np.asarray(own_ref),
                               rtol=2e-3, atol=2e-3)
    np.testing.assert_allclose(np.asarray(opp32), np.asarray(opp_ref),
                               rtol=2e-3, atol=2e-3)

    # 2) bf16-matmul configuration (the performance setting): looser tolerance.
    kparams_bf16 = prepare_kernel_params(params, matmul_dtype=jnp.bfloat16)
    own, opp = policy_head_forward(x, kparams_bf16)
    own = jax.block_until_ready(own)
    opp = jax.block_until_ready(opp)
    np.testing.assert_allclose(np.asarray(own), np.asarray(own_ref),
                               rtol=3e-2, atol=3e-2)
    np.testing.assert_allclose(np.asarray(opp), np.asarray(opp_ref),
                               rtol=3e-2, atol=3e-2)

    assert own.shape == (B, H * W + 1) and opp.shape == (B, H * W + 1)
    print("KERNEL_OK")
</pallas_src>

<mosaic_0001>
module attributes {stable_mosaic.version = 11 : i64} {
  func.func @policy_head_kernel(%arg0: i32, %arg1: memref<8x32x64xf32, #tpu.memory_space<vmem>>, %arg2: memref<32x32xf32, #tpu.memory_space<vmem>>, %arg3: memref<32x1xf32, #tpu.memory_space<vmem>>, %arg4: memref<48x18xf32, #tpu.memory_space<vmem>>, %arg5: memref<1x18xf32, #tpu.memory_space<vmem>>, %arg6: memref<16x128xf32, #tpu.memory_space<vmem>>, %arg7: memref<2x1xf32, #tpu.memory_space<vmem>>, %arg8: memref<2x8x128xf32, #tpu.memory_space<vmem>>) attributes {dimension_semantics = [#tpu.dimension_semantics<parallel>], iteration_bounds = array<i64: 2>, scalar_prefetch = 0 : i64, scratch_operands = 0 : i64, tpu.core_type = #tpu.core_type<tc>, window_params = [{transform_indices = @transform_0, window_bounds = array<i64: 8, 32, 64>}, {pipeline_mode = #tpu.pipeline_mode<synchronous>, transform_indices = @transform_1, window_bounds = array<i64: 32, 32>}, {pipeline_mode = #tpu.pipeline_mode<synchronous>, transform_indices = @transform_2, window_bounds = array<i64: 32, 1>}, {pipeline_mode = #tpu.pipeline_mode<synchronous>, transform_indices = @transform_3, window_bounds = array<i64: 48, 18>}, {pipeline_mode = #tpu.pipeline_mode<synchronous>, transform_indices = @transform_4, window_bounds = array<i64: 1, 18>}, {pipeline_mode = #tpu.pipeline_mode<synchronous>, transform_indices = @transform_5, window_bounds = array<i64: 16, 128>}, {pipeline_mode = #tpu.pipeline_mode<synchronous>, transform_indices = @transform_6, window_bounds = array<i64: 2, 1>}, {transform_indices = @transform_7, window_bounds = array<i64: 2, 8, 128>}]} {
    %c0 = arith.constant 0 : index
    %c0_0 = arith.constant 0 : index
    %c0_1 = arith.constant 0 : index
    %0 = vector.load %arg1[%c0, %c0_0, %c0_1] : memref<8x32x64xf32, #tpu.memory_space<vmem>>, vector<8x32x64xf32>
    %c0_2 = arith.constant 0 : index
    %c0_3 = arith.constant 0 : index
    %1 = vector.load %arg2[%c0_2, %c0_3] : memref<32x32xf32, #tpu.memory_space<vmem>>, vector<32x32xf32>
    %2 = vector.shape_cast %1 : vector<32x32xf32> to vector<1x32x32xf32>
    %3 = vector.broadcast %2 : vector<1x32x32xf32> to vector<8x32x32xf32>
    "tpu.trace_start"() <{level = 10 : i32, message = "bdc,bch->bdh"}> : () -> ()
    %cst = arith.constant dense<0.000000e+00> : vector<8x32x64xf32>
    %4 = tpu.matmul %3, %0, %cst {dimension_numbers = #tpu.dot_dimension_numbers<[2], [1], [1], [2], [0, 0, 0, 1, 1, 2], [0], [0]>} : vector<8x32x32xf32>, vector<8x32x64xf32>, vector<8x32x64xf32> -> vector<8x32x64xf32>
    "tpu.trace_stop"() : () -> ()
    %c0_4 = arith.constant 0 : index
    %c0_5 = arith.constant 0 : index
    %5 = vector.load %arg3[%c0_4, %c0_5] : memref<32x1xf32, #tpu.memory_space<vmem>>, vector<32x1xf32>
    %6 = vector.shape_cast %5 : vector<32x1xf32> to vector<1x32x1xf32>
    %7 = vector.broadcast %6 : vector<1x32x1xf32> to vector<8x32x64xf32>
    %8 = arith.addf %4, %7 : vector<8x32x64xf32>
    %9 = vector.extract_strided_slice %8 {offsets = [0, 0, 0], sizes = [8, 16, 64], strides = [1, 1, 1]} : vector<8x32x64xf32> to vector<8x16x64xf32>
    %10 = vector.extract_strided_slice %8 {offsets = [0, 16, 0], sizes = [8, 16, 64], strides = [1, 1, 1]} : vector<8x32x64xf32> to vector<8x16x64xf32>
    %cst_6 = arith.constant 0.000000e+00 : f32
    %11 = vector.broadcast %cst_6 : f32 to vector<8x16x64xf32>
    %12 = arith.maximumf %10, %11 : vector<8x16x64xf32>
    %cst_7 = arith.constant dense<0.000000e+00> : vector<8x16xf32>
    %13 = vector.multi_reduction <add>, %12, %cst_7 [2] : vector<8x16x64xf32> to vector<8x16xf32>
    %14 = vector.shape_cast %13 : vector<8x16xf32> to vector<8x16x1xf32>
    %cst_8 = arith.constant 1.562500e-02 : f32
    %15 = vector.broadcast %cst_8 : f32 to vector<8x16x1xf32>
    %16 = arith.mulf %14, %15 : vector<8x16x1xf32>
    %17 = vector.broadcast %16 : vector<8x16x1xf32> to vector<8x16x64xf32>
    %18 = arith.subf %12, %17 : vector<8x16x64xf32>
    %19 = arith.mulf %18, %18 : vector<8x16x64xf32>
    %cst_9 = arith.constant dense<0.000000e+00> : vector<8x16xf32>
    %20 = vector.multi_reduction <add>, %19, %cst_9 [2] : vector<8x16x64xf32> to vector<8x16xf32>
    %cst_10 = arith.constant 0.0158730168 : f32
    %21 = vector.broadcast %cst_10 : f32 to vector<8x16xf32>
    %22 = arith.mulf %20, %21 : vector<8x16xf32>
    %23 = math.sqrt %22 : vector<8x16xf32>
    %cst_11 = arith.constant dense<0.000000e+00> : vector<8x16xf32>
    %24 = vector.multi_reduction <add>, %12, %cst_11 [2] : vector<8x16x64xf32> to vector<8x16xf32>
    %cst_12 = arith.constant 1.562500e-02 : f32
    %25 = vector.broadcast %cst_12 : f32 to vector<8x16xf32>
    %26 = arith.mulf %24, %25 : vector<8x16xf32>
    %cst_13 = arith.constant dense<0xFF800000> : vector<8x16xf32>
    %27 = vector.multi_reduction <maximumf>, %12, %cst_13 [2] : vector<8x16x64xf32> to vector<8x16xf32>
    %28 = tpu.concatenate %26, %27, %23 in 1 : vector<8x16xf32>, vector<8x16xf32>, vector<8x16xf32> -> vector<8x48xf32>
    %c0_14 = arith.constant 0 : index
    %c0_15 = arith.constant 0 : index
    %29 = vector.load %arg4[%c0_14, %c0_15] : memref<48x18xf32, #tpu.memory_space<vmem>>, vector<48x18xf32>
    %cst_16 = arith.constant dense<0.000000e+00> : vector<8x18xf32>
    %30 = tpu.matmul %28, %29, %cst_16 {dimension_numbers = #tpu.dot_dimension_numbers<[1], [0], [0], [1], [0, 0, 1, 1], [], []>} : vector<8x48xf32>, vector<48x18xf32>, vector<8x18xf32> -> vector<8x18xf32>
    %c0_17 = arith.constant 0 : index
    %c0_18 = arith.constant 0 : index
    %31 = vector.load %arg5[%c0_17, %c0_18] : memref<1x18xf32, #tpu.memory_space<vmem>>, vector<1x18xf32>
    %32 = vector.broadcast %31 : vector<1x18xf32> to vector<8x18xf32>
    %33 = arith.addf %30, %32 : vector<8x18xf32>
    %34 = vector.extract_strided_slice %33 {offsets = [0, 0], sizes = [8, 16], strides = [1, 1]} : vector<8x18xf32> to vector<8x16xf32>
    %35 = vector.extract_strided_slice %33 {offsets = [0, 16], sizes = [8, 2], strides = [1, 1]} : vector<8x18xf32> to vector<8x2xf32>
    %36 = vector.shape_cast %34 : vector<8x16xf32> to vector<8x16x1xf32>
    %37 = vector.broadcast %36 : vector<8x16x1xf32> to vector<8x16x64xf32>
    %38 = arith.addf %9, %37 : vector<8x16x64xf32>
    %cst_19 = arith.constant 0.000000e+00 : f32
    %39 = vector.broadcast %cst_19 : f32 to vector<8x16x64xf32>
    %40 = arith.maximumf %38, %39 : vector<8x16x64xf32>
    %41 = vector.shape_cast %40 : vector<8x16x64xf32> to vector<128x64xf32>
    %c0_20 = arith.constant 0 : index
    %c0_21 = arith.constant 0 : index
    %42 = vector.load %arg6[%c0_20, %c0_21] : memref<16x128xf32, #tpu.memory_space<vmem>>, vector<16x128xf32>
    %cst_22 = arith.constant dense<0.000000e+00> : vector<16x64xf32>
    %43 = tpu.matmul %42, %41, %cst_22 {dimension_numbers = #tpu.dot_dimension_numbers<[1], [0], [0], [1], [0, 0, 1, 1], [], []>} : vector<16x128xf32>, vector<128x64xf32>, vector<16x64xf32> -> vector<16x64xf32>
    %44 = vector.shape_cast %43 : vector<16x64xf32> to vector<2x8x64xf32>
    %c0_23 = arith.constant 0 : index
    %c0_24 = arith.constant 0 : index
    %45 = vector.load %arg7[%c0_23, %c0_24] : memref<2x1xf32, #tpu.memory_space<vmem>>, vector<2x1xf32>
    %46 = vector.shape_cast %45 : vector<2x1xf32> to vector<2x1x1xf32>
    %47 = vector.broadcast %46 : vector<2x1x1xf32> to vector<2x8x64xf32>
    %48 = arith.addf %44, %47 : vector<2x8x64xf32>
    %c0_25 = arith.constant 0 : index
    %c0_26 = arith.constant 0 : index
    %c0_27 = arith.constant 0 : index
    %49 = vector.load %arg8[%c0_25, %c0_26, %c0_27] : memref<2x8x128xf32, #tpu.memory_space<vmem>>, vector<2x8x64xf32>
    tpu.vector_store %arg8[%c0_25, %c0_26, %c0_27], %48 {strides = array<i32>} : memref<2x8x128xf32, #tpu.memory_space<vmem>>, vector<2x8x64xf32>,
    %50 = vector.extract_strided_slice %35 {offsets = [0, 0], sizes = [8, 1], strides = [1, 1]} : vector<8x2xf32> to vector<8x1xf32>
    %c0_28 = arith.constant 0 : index
    %c0_29 = arith.constant 0 : index
    %c64 = arith.constant 64 : index
    %51 = vector.load %arg8[%c0_28, %c0_29, %c64] : memref<2x8x128xf32, #tpu.memory_space<vmem>>, vector<1x8x1xf32>
    %52 = vector.shape_cast %51 : vector<1x8x1xf32> to vector<8x1xf32>
    %53 = vector.shape_cast %50 : vector<8x1xf32> to vector<1x8x1xf32>
    tpu.vector_store %arg8[%c0_28, %c0_29, %c64], %53 {strides = array<i32>} : memref<2x8x128xf32, #tpu.memory_space<vmem>>, vector<1x8x1xf32>,
    %54 = vector.extract_strided_slice %35 {offsets = [0, 1], sizes = [8, 1], strides = [1, 1]} : vector<8x2xf32> to vector<8x1xf32>
    %c1 = arith.constant 1 : index
    %c0_30 = arith.constant 0 : index
    %c64_31 = arith.constant 64 : index
    %55 = vector.load %arg8[%c1, %c0_30, %c64_31] : memref<2x8x128xf32, #tpu.memory_space<vmem>>, vector<1x8x1xf32>
    %56 = vector.shape_cast %55 : vector<1x8x1xf32> to vector<8x1xf32>
    %57 = vector.shape_cast %54 : vector<8x1xf32> to vector<1x8x1xf32>
    tpu.vector_store %arg8[%c1, %c0_30, %c64_31], %57 {strides = array<i32>} : memref<2x8x128xf32, #tpu.memory_space<vmem>>, vector<1x8x1xf32>,
    return
  }
  func.func @transform_0(%arg0: i32) -> (i32, i32, i32) {
    %c0_i32 = arith.constant 0 : i32
    %c0_i32_0 = arith.constant 0 : i32
    %c0_i32_1 = arith.constant 0 : i32
    return %arg0, %c0_i32, %c0_i32_0 : i32, i32, i32
  }
  func.func @transform_1(%arg0: i32) -> (i32, i32) {
    %c0_i32 = arith.constant 0 : i32
    %c0_i32_0 = arith.constant 0 : i32
    %c0_i32_1 = arith.constant 0 : i32
    return %c0_i32, %c0_i32_0 : i32, i32
  }
  func.func @transform_2(%arg0: i32) -> (i32, i32) {
    %c0_i32 = arith.constant 0 : i32
    %c0_i32_0 = arith.constant 0 : i32
    %c0_i32_1 = arith.constant 0 : i32
    return %c0_i32, %c0_i32_0 : i32, i32
  }
  func.func @transform_3(%arg0: i32) -> (i32, i32) {
    %c0_i32 = arith.constant 0 : i32
    %c0_i32_0 = arith.constant 0 : i32
    %c0_i32_1 = arith.constant 0 : i32
    return %c0_i32, %c0_i32_0 : i32, i32
  }
  func.func @transform_4(%arg0: i32) -> (i32, i32) {
    %c0_i32 = arith.constant 0 : i32
    %c0_i32_0 = arith.constant 0 : i32
    %c0_i32_1 = arith.constant 0 : i32
    return %c0_i32, %c0_i32_0 : i32, i32
  }
  func.func @transform_5(%arg0: i32) -> (i32, i32) {
    %c0_i32 = arith.constant 0 : i32
    %c0_i32_0 = arith.constant 0 : i32
    %c0_i32_1 = arith.constant 0 : i32
    return %c0_i32, %c0_i32_0 : i32, i32
  }
  func.func @transform_6(%arg0: i32) -> (i32, i32) {
    %c0_i32 = arith.constant 0 : i32
    %c0_i32_0 = arith.constant 0 : i32
    %c0_i32_1 = arith.constant 0 : i32
    return %c0_i32, %c0_i32_0 : i32, i32
  }
  func.func @transform_7(%arg0: i32) -> (i32, i32, i32) {
    %c0_i32 = arith.constant 0 : i32
    %c0_i32_0 = arith.constant 0 : i32
    %c0_i32_1 = arith.constant 0 : i32
    return %c0_i32, %arg0, %c0_i32_0 : i32, i32, i32
  }
}

</mosaic_0001>

<bundles_post_ra>
// kernel: tpu_custom_call.1
= control target key start
LH: loop header
LB: loop body
LE: loop exit
PB: predicated region body
PF: predicated region fallthrough
CT: control target
= control target key end

     0   :  { %12 = vsyncpa [#allocation3], 0  ;;  %s3663_s0 = inlined_call_operand.hbm [shape: f32[16,32,64], index: 0, kind: input, shape index: {}]   ;;  %s3664_s1 = inlined_call_operand.vmem [shape: f32[32,32], index: 1, kind: input, shape index: {}]   ;;  %s3665_s2 = inlined_call_operand.vmem [shape: f32[32,1], index: 2, kind: input, shape index: {}]   ;;  %s3666_s3 = inlined_call_operand.vmem [shape: f32[48,18], index: 3, kind: input, shape index: {}]   ;;  %s3667_s4 = inlined_call_operand.vmem [shape: f32[1,18], index: 4, kind: input, shape index: {}]   ;;  %s3668_s5 = inlined_call_operand.vmem [shape: f32[16,128], index: 5, kind: input, shape index: {}]   ;;  %s3669_s6 = inlined_call_operand.vmem [shape: f32[2,1], index: 6, kind: input, shape index: {}]   ;;  %s3670_s7 = inlined_call_operand.hbm [shape: f32[2,16,128], index: 7, kind: output, shape index: {}]  }
   0x1   :  { %14 = vsyncpa [#allocation3 + $0x1], 0 }
   0x2   :  { %15 = vsyncpa [#allocation4], 0 }
   0x3   :  { %17 = vsyncpa [#allocation4 + $0x1], 0  ;;  %s2774_s24 = smov 0   ;;  %s2776_s25 = smov 0  }
   0x4   :  { %s2778_s26 = smov 0   ;;  %s2780_s27 = smov 0  }
   0x5 LB: > { %s2795_s28 = sadd.s32 4294967295, %s2718_s27   ;;  %s2122_s29 = sadd.s32 4294967294, %s2718_s27   ;;  %s2718_s27 = sphi %s2780_s27, %s3698_s27   ;;  %s2714_s26 = sphi %s2778_s26, %s3697_s26   ;;  %s2710_s25 = sphi %s2776_s25, %s3696_s25   ;;  %s2706_s24 = sphi %s2774_s24, %s3695_s24  }
   0x6   : > { %s2799_s30 = sadd.s32 1, %s2718_s27   ;;  %s30_s8 = sadd.s32 1, %s2714_s26 }
   0x7   : > { %s27_s9 = ssub.s32 %s2718_s27, %s2799_s30  ;;  %p37_p0 = scmp.ne.s32.totalorder %s2714_s26, %s2710_s25 }
   0x8   : > { %p28_p1 = scmp.eq.s32.totalorder %s27_s9, 0  ;;  %p38_p2 = scmp.eq.s32.totalorder %s2718_s27, 0 }
   0x9   : > { %p43_p3 = scmp.ne.s32.totalorder %s2710_s25, %s2706_s24  ;;  %p44_p4 = scmp.eq.s32.totalorder %s2795_s28, 0 }
   0xa   : > { %s2811_s10 = scalar_select %p28_p1, %s2714_s26, %s30_s8  }
   0xb   : > { %p2813_p5 = por %p38_p2, %p37_p0  ;;  %p2817_p6 = por %p44_p4, %p43_p3 }
   0xc   : > { %p193_p7 = scmp.eq.s32.totalorder %s2795_s28, 1  ;;  %p199_p8 = scmp.eq.s32.totalorder %s2122_s29, 1 }
   0xd   : > { %p2542_p10 = scmp.lt.s32.totalorder %s2718_s27, 2  ;;  %s237_s15 = sand.u32 1, %s2714_s26  }
   0xe   : > { %p2824_p11 = por %p193_p7, %p37_p0  ;;  %p2828_p12 = por %p199_p8, %p43_p3 }
   0xf   : > { %s2173_s16 = sshll.u32 %s2718_s27, 12  ;;  %s2125_s17 = sshll.u32 %s237_s15, 8 }
  0x10   : > { %s3679_s13 = scalar_select %p2824_p11, 1, 0 }
  0x11   : > { %s3680_s14 = scalar_select %p2828_p12, 1, 0 }
  0x12   : > { %s2837_s20 = scalar_lea.hbm %s3663_s0, %s2173_s16  ;;  %s241_s21 = scalar_lea.vmem [#allocation2], %s2125_s17 }
  0x13   : > { %s249_s22 = sshll.u32 %s241_s21, 4  ;;  %p2841_p13 = pnand %p2542_p10, %p2813_p5  ;;  %s2845_s22 = int_to_ptr.vmem [resolvable:$true] %s249_s22 }
  0x14   : > { %s2847_s29 = scalar_lea.sflag [#allocation3], %s237_s15  ;;  %s2622_s8 = scalar_lea.hbm %s2837_s20, 4096 }
  0x15   : > { %p2623_p0 = scmp.ne.s32.totalorder %s2837_s20, %s2622_s8  ;;  %p2624_p1 = pneg %p2841_p13 }
  0x16   : > { %s2627_s16 = scalar_lea.hbm %s3663_s0, 8192  ;;  %p2628_p4 = scmp.lt.u32.totalorder %s2837_s20, %s3663_s0 }
  0x17   : > { %p2625_p2 = pnand %p2624_p1, %p2623_p0  ;;  %p2629_p5 = scmp.lt.u32.totalorder %s2627_s16, %s2622_s8 }
  0x18   : > { %p2631_p8 = scmp.lt.u32.totalorder %s2622_s8, %s2837_s20 }
  0x19   : > { %p2626_p3 = pneg %p2625_p2  ;;  %p2630_p7 = por %p2629_p5, %p2628_p4 }
  0x1b   : > { %p2632_p10 = por %p2631_p8, %p2630_p7 }
  0x1d   : > { %p2633_p9 = pnand %p2632_p10, %p2626_p3 }
  0x1f   : > { %2636 = shalt.err (!%p2633_p9)
}
  0x20   : > { %s2637_s15 = scalar_lea.vmem %s2845_s22, 4096  ;;  %s2720_s19 = smov [#allocation2]  }
  0x21   : > { %p2638_p0 = scmp.ne.s32.totalorder %s2845_s22, %s2637_s15  ;;  %s2642_s21 = sshll.u32 %s2720_s19, 4  ;;  %s2643_s21 = int_to_ptr.vmem [resolvable:$false] %s2642_s21 }
  0x22   : > { %s2644_s9 = scalar_lea.vmem %s2643_s21, 8192  ;;  %p2645_p11 = scmp.lt.s32.totalorder %s2845_s22, %s2643_s21 }
  0x23   : > { %p2640_p2 = pnand %p2638_p0, %p2624_p1  ;;  %p2646_p4 = scmp.lt.s32.totalorder %s2644_s9, %s2637_s15 }
  0x25   : > { %p2641_p12 = pneg %p2640_p2  ;;  %p2647_p5 = por %p2646_p4, %p2645_p11 }
  0x27   : > { %p2648_p7 = pnand %p2647_p5, %p2641_p12 }
  0x29   : > { %2651 = shalt.err (!%p2648_p7)
}
  0x2a   : > { %s2721_s8 = smov 128   ;;  %s2722_s11 = smov 8  }
  0x2b   : > { %2537 = dma.hbm_to_vmem [thread:$0]  (!%p2841_p13), %s2837_s20, 4096, %s2845_s22, %s2847_s29, %s2721_s8, %s2721_s8, %s2722_s11  }
  0x2c   : > { %p2129_p9 = scmp.ge.s32.totalorder %s2718_s27, 1  ;;  %p257_p1 = scmp.lt.s32.totalorder %s2718_s27, 3 }
  0x2e   : > { %p258_p3 = pnand %p2129_p9, %p257_p1 }
  0x2f   : > { %s2878_s16 = sand.u32 (!%p258_p3), 1, %s2710_s25  }
  0x30   : > { %261 = sbr.rel (%p258_p3) target bundleno = 1263 (0x4ef), region = 48  ;;  %s2130_s17 = sshll.u32 (!%p258_p3), %s2878_s16, 8 }
  0x31   : > { %s264_s18 = scalar_lea.sflag (!%p258_p3), [#allocation3], %s2878_s16  ;;  %s2882_s15 = scalar_lea.vmem (!%p258_p3), [#allocation2], %s2130_s17 }
  0x37   : > { %2697 = dma.done.wait (%p2817_p6), %s264_s18, 4096  }
  0x38   : > { %2699 = vsyncadd (%p2817_p6), %s264_s18, 4294963200  ;;  %v2723_v0 = vmov 0   ;;  %v299_v1 = vld [vmem:[%s2882_s15] sm:$0xff]  ;;  %v300_v2 = vld [vmem:[%s2882_s15 + $0x8] sm:$0xff]  ;;  %vm3673_vm0 = vcmask 261120   ;;  %vm3672_vm1 = vcmask 523264  }
  0x39   : > { %2588 = vset.pattern.permute.xlu0 %v2723_v0  ;;  %2589 = vset.pattern.permute.xlu1 %v2723_v0  ;;  %v311_v3 = vld [vmem:[%s2882_s15 + $0x60] sm:$0xff]  ;;  %v2425_v4 = vpack.c.bf16 %v300_v2, %v299_v1  ;;  %v312_v5 = vld [vmem:[%s2882_s15 + $0x68] sm:$0xff]  ;;  %v301_v6 = vld [vmem:[%s2882_s15 + $0x10] sm:$0xff]  ;;  %vm1416_vm2 = vcmask 130112   ;;  %vm1481_vm3 = vcmask 1041409   ;;  %vm1483_vm4 = vcmask 1042434  }
  0x3a   : > { %v302_v7 = vld [vmem:[%s2882_s15 + $0x18] sm:$0xff]  ;;  %v2449_v8 = vpack.c.bf16 %v312_v5, %v311_v3  ;;  %v313_v10 = vld [vmem:[%s2882_s15 + $0x70] sm:$0xff]  ;;  %v2899_v12 = vld [vmem:[%s3664_s1] sm:$0xff]  ;;  %vm1485_vm5 = vcmask 1043459   ;;  %vm1487_vm6 = vcmask 1044484   ;;  %vm3676_vm7 = vcmask 1045509  }
  0x3b   : > { %v2429_v9 = vpack.c.bf16 %v302_v7, %v301_v6  ;;  %v314_v11 = vld [vmem:[%s2882_s15 + $0x78] sm:$0xff]  ;;  %2426 = vmatprep.subr.bf16.mxu0 %v2425_v4  ;;  %2271 = vmatprep.mubr.msk.f32.mxu0 %vm3673_vm0, %v2899_v12  ;;  %v303_v14 = vld [vmem:[%s2882_s15 + $0x20] sm:$0xff]  ;;  %v304_v15 = vld [vmem:[%s2882_s15 + $0x28] sm:$0xff]  ;;  %vm3675_vm8 = vcmask 1046534   ;;  %vm3674_vm9 = vcmask 1047559   ;;  %vm2725_vm10 = vmmov 0  }
  0x3c   : > { %v2453_v13 = vpack.c.bf16 %v314_v11, %v313_v10  ;;  %2450 = vmatprep.subr.bf16.mxu1 %v2449_v8  ;;  %2428 = vmatpush3.bf16.msra.mxu0 %v2425_v4  ;;  %v319_v16 = vld [vmem:[%s2882_s15 + $0xa0] sm:$0xff]  ;;  %v320_v17 = vld [vmem:[%s2882_s15 + $0xa8] sm:$0xff]  ;;  %v2433_v18 = vpack.c.bf16 %v304_v15, %v303_v14  ;;  %v305_v20 = vld [vmem:[%s2882_s15 + $0x30] sm:$0xff]  ;;  %vm1522_vm12 = vcmask 261312   ;;  %s2728_s8 = smov 48   ;;  %s2729_s11 = smov 47  }
  0x3d   : > { %2452 = vmatpush3.bf16.msra.mxu1 %v2449_v8  ;;  %2430 = vmatprep.subr.bf16.mxu0 %v2429_v9  ;;  %v2465_v19 = vpack.c.bf16 %v320_v17, %v319_v16  ;;  %v306_v21 = vld [vmem:[%s2882_s15 + $0x38] sm:$0xff]  ;;  %v2914_v22 = vld [vmem:[%s3664_s1 + $0x8] sm:$0xff]  ;;  %v321_v23 = vld [vmem:[%s2882_s15 + $0xb0] sm:$0xff]  ;;  %s2169_s12 = sshll.u32 %s2795_s28, 7  ;;  %s2037_s28 = scalar_lea.sflag [#allocation4], %s2878_s16 }
  0x3e   : > { %2454 = vmatprep.subr.bf16.mxu1 %v2453_v13  ;;  %2313 = vmatprep.mubr.msk.f32.mxu1 %vm3673_vm0, %v2899_v12  ;;  %v322_v24 = vld [vmem:[%s2882_s15 + $0xb8] sm:$0xff]  ;;  %v2921_v25 = vld [vmem:[%s3664_s1 + $0x10] sm:$0xff]  ;;  %v2437_v26 = vpack.c.bf16 %v306_v21, %v305_v20  ;;  %v307_v28 = vld [vmem:[%s2882_s15 + $0x40] sm:$0xff]  ;;  %s3615_s19 = scalar_lea.hbm %s3670_s7, %s2169_s12  ;;  %p3692_p11 = scmp.ne.s32.totalorder %s3679_s13, 0 }
  0x3f   : > { %v2469_v27 = vpack.c.bf16 %v322_v24, %v321_v23  ;;  %v308_v29 = vld [vmem:[%s2882_s15 + $0x48] sm:$0xff]  ;;  %v2932_v30 = vld [vmem:[%s3664_s1 + $0x18] sm:$0xff]  ;;  %v327_v31 = vld [vmem:[%s2882_s15 + $0xe0] sm:$0xff]  ;;  %s2730_s9 = smov [#allocation5]  }
  0x40   : > { %2432 = vmatpush3.bf16.msra.mxu0 %v2429_v9  ;;  %v328_v32 = vld [vmem:[%s2882_s15 + $0xe8] sm:$0xff]  ;;  %v2441_v33 = vpack.c.bf16 %v308_v29, %v307_v28  ;;  %v309_v35 = vld [vmem:[%s2882_s15 + $0x50] sm:$0xff]  ;;  %v310_v36 = vld [vmem:[%s2882_s15 + $0x58] sm:$0xff] }
  0x41   : > { %2456 = vmatpush3.bf16.msra.mxu1 %v2453_v13  ;;  %2434 = vmatprep.subr.bf16.mxu0 %v2433_v18  ;;  %v2481_v34 = vpack.c.bf16 %v328_v32, %v327_v31  ;;  %v329_v37 = vld [vmem:[%s2882_s15 + $0xf0] sm:$0xff]  ;;  %v330_v38 = vld [vmem:[%s2882_s15 + $0xf8] sm:$0xff]  ;;  %v2445_v39 = vpack.c.bf16 %v310_v36, %v309_v35  ;;  %v315_v41 = vld [vmem:[%s2882_s15 + $0x80] sm:$0xff] }
  0x42   : > { %2466 = vmatprep.subr.bf16.mxu1 %v2465_v19  ;;  %v2485_v40 = vpack.c.bf16 %v330_v38, %v329_v37  ;;  %v316_v42 = vld [vmem:[%s2882_s15 + $0x88] sm:$0xff]  ;;  %v317_v44 = vld [vmem:[%s2882_s15 + $0x90] sm:$0xff]  ;;  %v318_v45 = vld [vmem:[%s2882_s15 + $0x98] sm:$0xff] }
  0x43   : > { %2272 = vmatmul.mubr.msk.f32.vlgmr.msra.gmra.mrb[0].mxu0 %vm3673_vm0, %v2914_v22  ;;  %v2457_v43 = vpack.c.bf16 %v316_v42, %v315_v41  ;;  %v337_v46 = vld [vmem:[%s3665_s2 + $0x10] sm:$0xff]  ;;  %v2461_v47 = vpack.c.bf16 %v318_v45, %v317_v44  ;;  %v323_v48 = vld [vmem:[%s2882_s15 + $0xc0] sm:$0xff]  ;;  %v324_v49 = vld [vmem:[%s2882_s15 + $0xc8] sm:$0xff] }
  0x44   : > { %2314 = vmatmul.mubr.msk.f32.vlgmr.msra.gmra.mrb[0].mxu1 %vm3673_vm0, %v2914_v22  ;;  %2436 = vmatpush3.bf16.msra.mxu0 %v2433_v18  ;;  %v338_v50 = vld [vmem:[%s3665_s2 + $0x18] sm:$0xff]  ;;  %v2473_v51 = vpack.c.bf16 %v324_v49, %v323_v48  ;;  %v325_v52 = vld [vmem:[%s2882_s15 + $0xd0] sm:$0xff] }
  0x45   : > { %2468 = vmatpush3.bf16.msra.mxu1 %v2465_v19  ;;  %2274 = vmatprep.mubr.msk.f32.mxu0 %vm3673_vm0, %v2921_v25  ;;  %v326_v53 = vld [vmem:[%s2882_s15 + $0xd8] sm:$0xff]  ;;  %s2131_s15 = sshll.u32 %s2878_s16, 4 }
  0x46   : > { %2316 = vmatprep.mubr.msk.f32.mxu1 %vm3673_vm0, %v2921_v25  ;;  %2438 = vmatprep.subr.bf16.mxu0 %v2437_v26  ;;  %v2477_v54 = vpack.c.bf16 %v326_v53, %v325_v52  ;;  %s297_s20 = scalar_lea.vmem [#allocation5], %s2131_s15 }
  0x47   : > { %2275 = vmatmul.mubr.msk.f32.gmra.mrb[2].mxu0 %vm3673_vm0, %v2932_v30  ;;  %2470 = vmatprep.subr.bf16.mxu1 %v2469_v27  ;;  %s2049_s22 = sshll.u32 %s297_s20, 4  ;;  %s3617_s22 = int_to_ptr.vmem [resolvable:$true] %s2049_s22 }
  0x48   : > { %2317 = vmatmul.mubr.msk.f32.gmra.mrb[2].mxu1 %vm3673_vm0, %v2932_v30  ;;  %2440 = vmatpush3.bf16.msra.mxu0 %v2437_v26  ;;  %s2652_s21 = scalar_lea.vmem %s3617_s22, 256 }
  0x49   : > { %2472 = vmatpush3.bf16.msra.mxu1 %v2469_v27  ;;  %2285 = vmatprep.mubr.msk.f32.mxu0 %vm3673_vm0, %v2899_v12  ;;  %p2653_p6 = scmp.ne.s32.totalorder %s3617_s22, %s2652_s21 }
  0x4a   : > { %2341 = vmatprep.mubr.msk.f32.mxu1 %vm3673_vm0, %v2899_v12  ;;  %2442 = vmatprep.subr.bf16.mxu0 %v2441_v33 }
  0x4b   : > { %2286 = vmatmul.mubr.msk.f32.vlgmr.msra.gmra.mrb[4].mxu0 %vm3673_vm0, %v2914_v22  ;;  %2482 = vmatprep.subr.bf16.mxu1 %v2481_v34  ;;  %p2654_p12 = pnand %p2653_p6, %p3692_p11 }
  0x4c   : > { %2342 = vmatmul.mubr.msk.f32.vlgmr.msra.gmra.mrb[4].mxu1 %vm3673_vm0, %v2914_v22  ;;  %2444 = vmatpush3.bf16.msra.mxu0 %v2441_v33 }
  0x4d   : > { %2484 = vmatpush3.bf16.msra.mxu1 %v2481_v34  ;;  %2288 = vmatprep.mubr.msk.f32.mxu0 %vm3673_vm0, %v2921_v25  ;;  %p2655_p13 = pneg %p2654_p12 }
  0x4e   : > { %2344 = vmatprep.mubr.msk.f32.mxu1 %vm3673_vm0, %v2921_v25  ;;  %2446 = vmatprep.subr.bf16.mxu0 %v2445_v39 }
  0x4f   : > { %2289 = vmatmul.mubr.msk.f32.gmra.mrb[6].mxu0 %vm3673_vm0, %v2932_v30  ;;  %2486 = vmatprep.subr.bf16.mxu1 %v2485_v40 }
  0x50   : > { %2345 = vmatmul.mubr.msk.f32.gmra.mrb[6].mxu1 %vm3673_vm0, %v2932_v30  ;;  %2448 = vmatpush3.bf16.msra.mxu0 %v2445_v39 }
  0x51   : > { %2488 = vmatpush3.bf16.msra.mxu1 %v2485_v40  ;;  %2299 = vmatprep.mubr.msk.f32.mxu0 %vm3673_vm0, %v2899_v12 }
  0x52   : > { %2369 = vmatprep.mubr.msk.f32.mxu1 %vm3673_vm0, %v2899_v12  ;;  %2458 = vmatprep.subr.bf16.mxu0 %v2457_v43 }
  0x53   : > { %2300 = vmatmul.mubr.msk.f32.vlgmr.msra.gmra.mrb[8].mxu0 %vm3673_vm0, %v2914_v22  ;;  %351 = vperm.xlu0 %2588, %v337_v46  }
  0x54   : > { %2370 = vmatmul.mubr.msk.f32.vlgmr.msra.gmra.mrb[8].mxu1 %vm3673_vm0, %v2914_v22  ;;  %2460 = vmatpush3.bf16.msra.mxu0 %v2457_v43 }
  0x55   : > { %2302 = vmatprep.mubr.msk.f32.mxu0 %vm3673_vm0, %v2921_v25  ;;  %2372 = vmatprep.mubr.msk.f32.mxu1 %vm3673_vm0, %v2921_v25 }
  0x56   : > { %2462 = vmatprep.subr.bf16.mxu0 %v2461_v47 }
  0x57   : > { %2303 = vmatmul.mubr.msk.f32.gmra.mrb[10].mxu0 %vm3673_vm0, %v2932_v30  ;;  %356 = vperm.xlu0 %2588, %v338_v50  }
  0x58   : > { %2373 = vmatmul.mubr.msk.f32.gmra.mrb[10].mxu1 %vm3673_vm0, %v2932_v30  ;;  %2464 = vmatpush3.bf16.msra.mxu0 %v2461_v47 }
  0x59   : > { %2327 = vmatprep.mubr.msk.f32.mxu0 %vm3673_vm0, %v2899_v12  ;;  %2474 = vmatprep.subr.bf16.mxu0 %v2473_v51 }
  0x5b   : > { %2328 = vmatmul.mubr.msk.f32.vlgmr.msra.gmra.mrb[12].mxu0 %vm3673_vm0, %v2914_v22 }
  0x5c   : > { %2476 = vmatpush3.bf16.msra.mxu0 %v2473_v51  ;;  %2330 = vmatprep.mubr.msk.f32.mxu0 %vm3673_vm0, %v2921_v25 }
  0x5d   : > { %2478 = vmatprep.subr.bf16.mxu0 %v2477_v54 }
  0x5f   : > { %2331 = vmatmul.mubr.msk.f32.gmra.mrb[14].mxu0 %vm3673_vm0, %v2932_v30 }
  0x60   : > { %2480 = vmatpush3.bf16.msra.mxu0 %v2477_v54  ;;  %2355 = vmatprep.mubr.msk.f32.mxu0 %vm3673_vm0, %v2899_v12 }
  0x63   : > { %2356 = vmatmul.mubr.msk.f32.vlgmr.msra.gmra.mrb[16].mxu0 %vm3673_vm0, %v2914_v22 }
  0x64   : > { %2358 = vmatprep.mubr.msk.f32.mxu0 %vm3673_vm0, %v2921_v25 }
  0x67   : > { %2359 = vmatmul.mubr.msk.f32.gmra.mrb[18].mxu0 %vm3673_vm0, %v2932_v30 }
  0xd2   : > { %v3010_v55 = vpop.permute.xlu0 %351 }
  0xd6   : > { %v3020_v60 = vpop.permute.xlu0 %356 }
 0x116   : > { %v3012_v56 = vpop.f32.mrb[0].mxu0 }
 0x117   : > { %v3014_v57 = vpop.f32.mrb[1].mxu0  ;;  %v3016_v58 = vpop.f32.mrb[0].mxu1 }
 0x118   : > { %v3018_v59 = vpop.f32.mrb[1].mxu1 }
 0x11a   : > { %v2276_v61 = vpop.f32.mrb[2].mxu0 }
 0x11b   : > { %v454_v62 = vadd.f32 %v2276_v61, %v3020_v60  ;;  %v2318_v63 = vpop.f32.mrb[2].mxu1  ;;  %v448_v0 = vpop.f32.mrb[3].mxu0 }
 0x11c   : > { %v709_v1 = vadd.f32 %v2318_v63, %v3020_v60  ;;  %v703_v2 = vpop.f32.mrb[3].mxu1  ;;  %v449_v6 = vadd.f32 %v448_v0, %v3010_v55 }
 0x11d   : > { %v3024_v3 = vmax.f32 %v454_v62, 0.0  ;;  %v704_v13 = vadd.f32 %v703_v2, %v3010_v55 }
 0x11e   : > { %v3026_v4 = vpop.f32.mrb[4].mxu0  ;;  %v3028_v5 = vmax.f32 %v709_v1, 0.0  ;;  %v3039_v12 = vmax.f32 %v449_v6, 0.0 }
 0x11f   : > { %v3031_v7 = vpop.f32.mrb[4].mxu1  ;;  %v1072_v8 = vsel %vm3672_vm1, %v3024_v3, 0.0  ;;  %v3035_v9 = vpop.f32.mrb[5].mxu0  ;;  %v3050_v22 = vmax.f32 %v704_v13, 0.0 }
 0x120   : > { %1073 = vadd.xlane.f32.xlu1 %v1072_v8  ;;  %v3037_v10 = vpop.f32.mrb[5].mxu1  ;;  %v1090_v16 = vsel %vm3672_vm1, %v3028_v5, 0.0  ;;  %v1069_v25 = vsel %vm3672_vm1, %v3039_v12, 0.0 }
 0x121   : > { %v1087_v35 = vsel %vm3672_vm1, %v3050_v22, 0.0 }
 0x122   : > { %v2290_v11 = vpop.f32.mrb[6].mxu0 }
 0x123   : > { %v2346_v14 = vpop.f32.mrb[6].mxu1  ;;  %v533_v15 = vpop.f32.mrb[7].mxu0  ;;  %v539_v23 = vadd.f32 %v2290_v11, %v3020_v60 }
 0x124   : > { %v879_v17 = vadd.f32 %v2346_v14, %v3020_v60  ;;  %v534_v18 = vadd.f32 %v533_v15, %v3010_v55  ;;  %v873_v19 = vpop.f32.mrb[7].mxu1  ;;  %1091 = vadd.xlane.f32.xlu1 %v1090_v16 }
 0x125   : > { %v3065_v31 = vmax.f32 %v539_v23, 0.0  ;;  %v874_v32 = vadd.f32 %v873_v19, %v3010_v55  ;;  %v1344_v19 = vsel %vm3672_vm1, %v3024_v3, -inf }
 0x126   : > { %v3046_v20 = vmax.f32 %v879_v17, 0.0  ;;  %v3048_v21 = vpop.f32.mrb[8].mxu0  ;;  %v3059_v27 = vmax.f32 %v534_v18, 0.0 }
 0x127   : > { %v3053_v24 = vpop.f32.mrb[8].mxu1  ;;  %v3057_v26 = vpop.f32.mrb[9].mxu0  ;;  %v3074_v39 = vmax.f32 %v874_v32, 0.0  ;;  %v1078_v41 = vsel %vm3672_vm1, %v3065_v31, 0.0 }
 0x128   : > { %v1102_v28 = vsel %vm3672_vm1, %v3046_v20, 0.0  ;;  %1070 = vadd.xlane.f32.xlu1 %v1069_v25  ;;  %v3063_v29 = vpop.f32.mrb[9].mxu1  ;;  %v1075_v37 = vsel %vm3672_vm1, %v3059_v27, 0.0  ;;  %v1347_v32 = vsel %vm3672_vm1, %v3059_v27, -inf }
 0x129   : > { %1103 = vadd.xlane.f32.xlu0 %v1102_v28  ;;  %v1099_v47 = vsel %vm3672_vm1, %v3074_v39, 0.0 }
 0x12a   : > { %v2304_v30 = vpop.f32.mrb[10].mxu0 }
 0x12b   : > { %v2374_v33 = vpop.f32.mrb[10].mxu1  ;;  %v618_v34 = vpop.f32.mrb[11].mxu0  ;;  %v624_v40 = vadd.f32 %v2304_v30, %v3020_v60  ;;  %v1341_v30 = vsel %vm3672_vm1, %v3039_v12, -inf }
 0x12c   : > { %v1043_v36 = vpop.f32.mrb[11].mxu1  ;;  %1088 = vadd.xlane.f32.xlu1 %v1087_v35  ;;  %v619_v45 = vadd.f32 %v618_v34, %v3010_v55  ;;  %v1049_v53 = vadd.f32 %v2374_v33, %v3020_v60  ;;  %v1405_v34 = vlaneseq }
 0x12d   : > { %1076 = vadd.xlane.f32.xlu0 %v1075_v37  ;;  %v3081_v44 = vmax.f32 %v624_v40, 0.0 }
 0x12e   : > { %v3072_v38 = vpop.f32.mrb[12].mxu0  ;;  %v3088_v49 = vmax.f32 %v619_v45, 0.0  ;;  %v3104_v6 = vmax.f32 %v1049_v53, 0.0  ;;  %v3138_v35 = vand.u32 127, %v1405_v34  ;;  %v3140_v40 = vshrl.u32 %v1405_v34, 7 }
 0x12f   : > { %v3079_v42 = vpop.f32.mrb[13].mxu0  ;;  %v1084_v51 = vsel %vm3672_vm1, %v3081_v44, 0.0  ;;  %v1356_v28 = vsel %vm3672_vm1, %v3081_v44, -inf }
 0x130   : > { %1079 = vadd.xlane.f32.xlu1 %v1078_v41  ;;  %v1081_v1 = vsel %vm3672_vm1, %v3088_v49, 0.0  ;;  %v1114_v16 = vsel %vm3672_vm1, %v3104_v6, 0.0  ;;  %v1353_v33 = vsel %vm3672_vm1, %v3088_v49, -inf  ;;  %v1411_v41 = vadd.s32 4294967288, %v3138_v35 }
 0x132   : > { %v2332_v43 = vpop.f32.mrb[14].mxu0 }
 0x133   : > { %v788_v46 = vpop.f32.mrb[15].mxu0  ;;  %v794_v50 = vadd.f32 %v2332_v43, %v3020_v60 }
 0x134   : > { %1100 = vadd.xlane.f32.xlu1 %v1099_v47  ;;  %v789_v62 = vadd.f32 %v788_v46, %v3010_v55 }
 0x135   : > { %v3096_v61 = vmax.f32 %v794_v50, 0.0  ;;  %v3145_v50 = vsub.s32 %v1411_v41, %v3140_v40 }
 0x136   : > { %v3086_v48 = vpop.f32.mrb[16].mxu0  ;;  %v3106_v8 = vmax.f32 %v789_v62, 0.0 }
 0x137   : > { %v3093_v52 = vpop.f32.mrb[17].mxu0  ;;  %v1096_v14 = vsel %vm3672_vm1, %v3096_v61, 0.0 }
 0x138   : > { %1085 = vadd.xlane.f32.xlu1 %v1084_v51  ;;  %v1093_v17 = vsel %vm3672_vm1, %v3106_v8, 0.0 }
 0x13a   : > { %v2360_v54 = vpop.f32.mrb[18].mxu0 }
 0x13b   : > { %v964_v63 = vadd.f32 %v2360_v54, %v3020_v60  ;;  %v958_v0 = vpop.f32.mrb[19].mxu0  ;;  %v1044_v60 = vadd.f32 %v1043_v36, %v3010_v55  ;;  %v3151_v54 = vsub.s32 %v3138_v35, %v3140_v40 }
 0x13c   : > { %1082 = vadd.xlane.f32.xlu1 %v1081_v1  ;;  %v959_v11 = vadd.f32 %v958_v0, %v3010_v55  ;;  %v1350_v55 = vsel %vm3672_vm1, %v3065_v31, -inf }
 0x13d   : > { %v3102_v2 = vmax.f32 %v964_v63, 0.0  ;;  %v3120_v18 = vmax.f32 %v1044_v60, 0.0 }
 0x13e   : > { %v3114_v15 = vmax.f32 %v959_v11, 0.0 }
 0x13f   : > { %v1108_v13 = vsel %vm3672_vm1, %v3102_v2, 0.0  ;;  %v1111_v25 = vsel %vm3672_vm1, %v3120_v18, 0.0 }
 0x140   : > { %1109 = vadd.xlane.f32.xlu0 %v1108_v13  ;;  %1097 = vadd.xlane.f32.xlu1 %v1096_v14  ;;  %v1105_v23 = vsel %vm3672_vm1, %v3114_v15, 0.0 }
 0x144   : > { %1115 = vadd.xlane.f32.xlu0 %v1114_v16  ;;  %1094 = vadd.xlane.f32.xlu1 %v1093_v17 }
 0x148   : > { %1345 = vmax.xlane.f32.xlu0 %v1344_v19  ;;  %1106 = vadd.xlane.f32.xlu1 %v1105_v23 }
 0x14c   : > { %1351 = vmax.xlane.f32.xlu0 %v1350_v55  ;;  %1112 = vadd.xlane.f32.xlu1 %v1111_v25 }
 0x150   : > { %1357 = vmax.xlane.f32.xlu0 %v1356_v28  ;;  %1342 = vmax.xlane.f32.xlu1 %v1341_v30 }
 0x154   : > { %1348 = vmax.xlane.f32.xlu1 %v1347_v32 }
 0x158   : > { %1354 = vmax.xlane.f32.xlu1 %v1353_v33 }
 0x1ad   : > { %v1074_v36 = vpop.xlane.xlu1 %1073 }
 0x1ae   : > { %v1118_v37 = vmul.f32 0.015625, %v1074_v36 }
 0x1b0   : > { %v1134_v43 = vsub.f32 %v3024_v3, %v1118_v37  ;;  %v1415_v3 = vrot.slane %v1118_v37, %v3145_v50 }
 0x1b1   : > { %v1092_v45 = vpop.xlane.xlu1 %1091 }
 0x1b2   : > { %v1124_v46 = vmul.f32 0.015625, %v1092_v45  ;;  %v1150_v47 = vmul.f32 %v1134_v43, %v1134_v43 }
 0x1b4   : > { %v1140_v51 = vsub.f32 %v3028_v5, %v1124_v46  ;;  %v1168_v53 = vsel %vm3672_vm1, %v1150_v47, 0.0  ;;  %v1443_v28 = vrot.slane %v1124_v46, %v3145_v50 }
 0x1b5   : > { %1169 = vadd.xlane.f32.xlu0 %v1168_v53  ;;  %v1071_v62 = vpop.xlane.xlu1 %1070 }
 0x1b6   : > { %v1104_v63 = vpop.xlane.xlu0 %1103  ;;  %v1117_v0 = vmul.f32 0.015625, %v1071_v62  ;;  %v1156_v1 = vmul.f32 %v1140_v51, %v1140_v51 }
 0x1b7   : > { %v1128_v55 = vmul.f32 0.015625, %v1104_v63 }
 0x1b8   : > { %v1133_v11 = vsub.f32 %v3039_v12, %v1117_v0  ;;  %v1410_v13 = vrot.slane %v1117_v0, %v3151_v54  ;;  %v1186_v14 = vsel %vm3672_vm1, %v1156_v1, 0.0 }
 0x1b9   : > { %1187 = vadd.xlane.f32.xlu0 %v1186_v14  ;;  %v1089_v60 = vpop.xlane.xlu1 %1088  ;;  %v1144_v43 = vsub.f32 %v3046_v20, %v1128_v55  ;;  %v1461_v1 = vrot.slane %v1128_v55, %v3145_v50 }
 0x1ba   : > { %v1417_v16 = vsel %vm1416_vm2, %v1415_v3, %v1410_v13  ;;  %v1077_v17 = vpop.xlane.xlu0 %1076  ;;  %v1123_v19 = vmul.f32 0.015625, %v1089_v60  ;;  %v1149_v23 = vmul.f32 %v1133_v11, %v1133_v11 }
 0x1bb   : > { %v1119_v25 = vmul.f32 0.015625, %v1077_v17  ;;  %v1160_v11 = vmul.f32 %v1144_v43, %v1144_v43 }
 0x1bc   : > { %v1139_v30 = vsub.f32 %v3050_v22, %v1123_v19  ;;  %v1439_v32 = vrot.slane %v1123_v19, %v3151_v54  ;;  %v1165_v12 = vsel %vm3672_vm1, %v1149_v23, 0.0 }
 0x1bd   : > { %v1135_v33 = vsub.f32 %v3059_v27, %v1119_v25  ;;  %1166 = vadd.xlane.f32.xlu1 %v1165_v12  ;;  %v1080_v34 = vpop.xlane.xlu1 %1079  ;;  %v1421_v45 = vrot.slane %v1119_v25, %v3151_v54 }
 0x1be   : > { %v1444_v36 = vsel %vm1416_vm2, %v1443_v28, %v1439_v32  ;;  %v1120_v37 = vmul.f32 0.015625, %v1080_v34  ;;  %v1155_v41 = vmul.f32 %v1139_v30, %v1139_v30 }
 0x1bf   : > { %v1151_v53 = vmul.f32 %v1135_v33, %v1135_v33 }
 0x1c0   : > { %v1136_v46 = vsub.f32 %v3065_v31, %v1120_v37  ;;  %v1425_v47 = vrot.slane %v1120_v37, %v3145_v50  ;;  %v1183_v51 = vsel %vm3672_vm1, %v1155_v41, 0.0 }
 0x1c1   : > { %1184 = vadd.xlane.f32.xlu1 %v1183_v51  ;;  %v1101_v27 = vpop.xlane.xlu1 %1100  ;;  %v1171_v14 = vsel %vm3672_vm1, %v1151_v53, 0.0 }
 0x1c2   : > { %v1426_v62 = vsel %vm1416_vm2, %v1425_v47, %v1421_v45  ;;  %v1127_v63 = vmul.f32 0.015625, %v1101_v27  ;;  %v1152_v0 = vmul.f32 %v1136_v46, %v1136_v46 }
 0x1c3   : > { %v1482_v3 = vsel %vm1481_vm3, %v1426_v62, %v1417_v16  ;;  %v1198_v16 = vsel %vm3672_vm1, %v1160_v11, 0.0 }
 0x1c4   : > { %v1143_v13 = vsub.f32 %v3074_v39, %v1127_v63  ;;  %v1457_v31 = vrot.slane %v1127_v63, %v3151_v54  ;;  %v1174_v60 = vsel %vm3672_vm1, %v1152_v0, 0.0 }
 0x1c5   : > { %1172 = vadd.xlane.f32.xlu1 %v1171_v14  ;;  %1175 = vadd.xlane.f32.xlu0 %v1174_v60  ;;  %v1086_v17 = vpop.xlane.xlu1 %1085 }
 0x1c6   : > { %v1462_v19 = vsel %vm1416_vm2, %v1461_v1, %v1457_v31  ;;  %v1122_v23 = vmul.f32 0.015625, %v1086_v17  ;;  %v1159_v25 = vmul.f32 %v1143_v13, %v1143_v13 }
 0x1c8   : > { %v1138_v55 = vsub.f32 %v3081_v44, %v1122_v23  ;;  %v1195_v28 = vsel %vm3672_vm1, %v1159_v25, 0.0  ;;  %v1434_v33 = vrot.slane %v1122_v23, %v3145_v50 }
 0x1c9   : > { %1199 = vadd.xlane.f32.xlu0 %v1198_v16  ;;  %1196 = vadd.xlane.f32.xlu1 %v1195_v28  ;;  %v1083_v30 = vpop.xlane.xlu1 %1082 }
 0x1ca   : > { %v1121_v32 = vmul.f32 0.015625, %v1083_v30  ;;  %v1154_v12 = vmul.f32 %v1138_v55, %v1138_v55 }
 0x1cc   : > { %v1137_v34 = vsub.f32 %v3088_v49, %v1121_v32  ;;  %v1430_v37 = vrot.slane %v1121_v32, %v3151_v54  ;;  %v1180_v41 = vsel %vm3672_vm1, %v1154_v12, 0.0 }
 0x1cd   : > { %v1110_v43 = vpop.xlane.xlu0 %1109  ;;  %1181 = vadd.xlane.f32.xlu0 %v1180_v41  ;;  %v1098_v44 = vpop.xlane.xlu1 %1097 }
 0x1ce   : > { %v1435_v45 = vsel %vm1416_vm2, %v1434_v33, %v1430_v37  ;;  %v1153_v46 = vmul.f32 %v1137_v34, %v1137_v34  ;;  %v1126_v51 = vmul.f32 0.015625, %v1098_v44  ;;  %v1130_v1 = vmul.f32 0.015625, %v1110_v43 }
 0x1cf   : > { %v1484_v47 = vsel %vm1483_vm4, %v1435_v45, %v1482_v3 }
 0x1d0   : > { %v1177_v27 = vsel %vm3672_vm1, %v1153_v46, 0.0  ;;  %v1486_v62 = vsel %vm1485_vm5, %v1444_v36, %v1484_v47  ;;  %v1142_v11 = vsub.f32 %v3096_v61, %v1126_v51  ;;  %v1452_v13 = vrot.slane %v1126_v51, %v3145_v50 }
 0x1d1   : > { %v1116_v53 = vpop.xlane.xlu0 %1115  ;;  %v1095_v49 = vpop.xlane.xlu1 %1094  ;;  %1178 = vadd.xlane.f32.xlu1 %v1177_v27  ;;  %v1146_v23 = vsub.f32 %v3102_v2, %v1130_v1  ;;  %v1470_v25 = vrot.slane %v1130_v1, %v3145_v50  ;;  %v1368_v1 = vsel %vm3672_vm1, %v3096_v61, -inf  ;;  %v1386_v61 = vsel %vm3672_vm1, %v3104_v6, -inf }
 0x1d2   : > { %v1132_v63 = vmul.f32 0.015625, %v1116_v53  ;;  %v1125_v0 = vmul.f32 0.015625, %v1095_v49  ;;  %v1158_v32 = vmul.f32 %v1142_v11, %v1142_v11 }
 0x1d3   : > { %v1162_v43 = vmul.f32 %v1146_v23, %v1146_v23  ;;  %v1701_v23 = vld [vmem:[%s3666_s3 + $0x20] sm:$0xff] }
 0x1d4   : > { %v1148_v31 = vsub.f32 %v3104_v6, %v1132_v63  ;;  %v1448_v3 = vrot.slane %v1125_v0, %v3151_v54  ;;  %v1479_v37 = vrot.slane %v1132_v63, %v3145_v50  ;;  %v1141_v44 = vsub.f32 %v3106_v8, %v1125_v0  ;;  %v1698_v6 = vld [vmem:[%s3666_s3 + $0x8] sm:$0xff] }
 0x1d5   : > { %v1107_v14 = vpop.xlane.xlu1 %1106  ;;  %v1192_v46 = vsel %vm3672_vm1, %v1158_v32, 0.0  ;;  %v1204_v27 = vsel %vm3672_vm1, %v1162_v43, 0.0 }
 0x1d6   : > { %v1453_v60 = vsel %vm1416_vm2, %v1452_v13, %v1448_v3  ;;  %v1129_v17 = vmul.f32 0.015625, %v1107_v14  ;;  %v1164_v36 = vmul.f32 %v1148_v31, %v1148_v31  ;;  %v1157_v49 = vmul.f32 %v1141_v44, %v1141_v44 }
 0x1d7   : > { %v1488_v55 = vsel %vm1487_vm6, %v1453_v60, %v1486_v62  ;;  %v1374_v13 = vsel %vm3672_vm1, %v3046_v20, -inf  ;;  %v1359_v31 = vsel %vm3672_vm1, %v3050_v22, -inf  ;;  %v1365_v3 = vsel %vm3672_vm1, %v3106_v8, -inf  ;;  %v1700_v60 = vld [vmem:[%s3666_s3 + $0x18] sm:$0xff] }
 0x1d8   : > { %v1490_v16 = vsel %vm3676_vm7, %v1462_v19, %v1488_v55  ;;  %v1466_v28 = vrot.slane %v1129_v17, %v3151_v54  ;;  %v1210_v30 = vsel %vm3672_vm1, %v1164_v36, 0.0  ;;  %v1145_v50 = vsub.f32 %v3114_v15, %v1129_v17  ;;  %v335_v36 = vld [vmem:[%s3665_s2] sm:$0xff] }
 0x1d9   : > { %1211 = vadd.xlane.f32.xlu0 %v1210_v30  ;;  %v1113_v12 = vpop.xlane.xlu1 %1112  ;;  %v1189_v63 = vsel %vm3672_vm1, %v1157_v49, 0.0  ;;  %v1371_v14 = vsel %vm3672_vm1, %v3074_v39, -inf  ;;  %v1377_v20 = vsel %vm3672_vm1, %v3114_v15, -inf  ;;  %v1383_v22 = vsel %vm3672_vm1, %v3120_v18, -inf  ;;  %v336_v15 = vld [vmem:[%s3665_s2 + $0x8] sm:$0xff] }
 0x1da   : > { %v1471_v33 = vsel %vm1416_vm2, %v1470_v25, %v1466_v28  ;;  %v1131_v34 = vmul.f32 0.015625, %v1113_v12  ;;  %v1161_v0 = vmul.f32 %v1145_v50, %v1145_v50  ;;  %v2724_v39 = vmov 0.0|0.0   ;;  %v1702_v25 = vld [vmem:[%s3666_s3 + $0x28] sm:$0xff]  ;;  %v3259_v28 = vpop.xlane.xlu0 %1345 }
 0x1db   : > { %v1492_v41 = vsel %vm3675_vm8, %v1471_v33, %v1490_v16  ;;  %2489 = vmatprep.subr.bf16.mxu0 %v2724_v39  ;;  %v2496_v55 = vpack.c.bf16 %v1702_v25, %v1701_v23  ;;  %v2726_v16 = vmov 0.0  }
 0x1dc   : > { %v1147_v19 = vsub.f32 %v3120_v18, %v1131_v34  ;;  %v1475_v45 = vrot.slane %v1131_v34, %v3151_v54  ;;  %v1362_v54 = vsel %vm3672_vm1, %v3028_v5, -inf  ;;  %v1201_v11 = vsel %vm3672_vm1, %v1161_v0, 0.0  ;;  %v1699_v18 = vld [vmem:[%s3666_s3 + $0x10] sm:$0xff]  ;;  %2387 = vmatprep.mubr.msk.f32.mxu0 %vm2725_vm10, %v2726_v16 }
 0x1dd   : > { %1193 = vadd.xlane.f32.xlu0 %v1192_v46  ;;  %v1380_v5 = vsel %vm3672_vm1, %v3102_v2, -inf  ;;  %v1697_v2 = vld [vmem:[%s3666_s3] sm:$0xff]  ;;  %v2493_v17 = vpack.c.bf16 %v1700_v60, %v1699_v18  ;;  %v3261_v30 = vpop.xlane.xlu1 %1342 }
 0x1de   : > { %v1480_v47 = vsel %vm1416_vm2, %v1479_v37, %v1475_v45  ;;  %v1163_v51 = vmul.f32 %v1147_v19, %v1147_v19  ;;  %v2490_v8 = vpack.c.bf16 %v1698_v6, %v1697_v2  ;;  %v1352_v32 = vpop.xlane.xlu0 %1351  ;;  %v1616_v2 = vadd.s32 4294967256, %v3138_v35 }
 0x1df   : > { %v3208_v53 = vsel %vm3674_vm9, %v1480_v47, %v1492_v41  ;;  %v1611_v6 = vadd.s32 4294967264, %v3138_v35 }
 0x1e0   : > { %v1207_v62 = vsel %vm3672_vm1, %v1163_v51, 0.0  ;;  %2491 = vmatpush3.bf16.msra.mxu0 %v2490_v8 }
 0x1e1   : > { %1205 = vadd.xlane.f32.xlu0 %v1204_v27  ;;  %1208 = vadd.xlane.f32.xlu1 %v1207_v62  ;;  %v1349_v12 = vpop.xlane.xlu1 %1348  ;;  %v3315_v16 = vsub.s32 %v1611_v6, %v3140_v40 }
 0x1e2   : > { %2492 = vmatprep.subr.bf16.mxu0 %v2724_v39  ;;  %v3263_v33 = vpop.xlane.xlu0 %1357 }
 0x1e4   : > { %2494 = vmatpush3.bf16.msra.mxu0 %v2493_v17 }
 0x1e5   : > { %1363 = vmax.xlane.f32.xlu0 %v1362_v54  ;;  %1190 = vadd.xlane.f32.xlu1 %v1189_v63  ;;  %v3265_v34 = vpop.xlane.xlu1 %1354 }
 0x1e6   : > { %2495 = vmatprep.subr.bf16.mxu0 %v2724_v39 }
 0x1e8   : > { %2497 = vmatpush3.bf16.msra.mxu0 %v2496_v55 }
 0x1e9   : > { %1369 = vmax.xlane.f32.xlu0 %v1368_v1  ;;  %1202 = vadd.xlane.f32.xlu1 %v1201_v11  ;;  %v1517_v1 = vadd.s32 4294967272, %v3138_v35  ;;  %v1512_v11 = vadd.s32 4294967280, %v3138_v35  ;;  %v3309_v35 = vsub.s32 %v1616_v2, %v3140_v40 }
 0x1ed   : > { %1375 = vmax.xlane.f32.xlu0 %v1374_v13  ;;  %1360 = vmax.xlane.f32.xlu1 %v1359_v31 }
 0x1f1   : > { %1381 = vmax.xlane.f32.xlu0 %v1380_v5  ;;  %1366 = vmax.xlane.f32.xlu1 %v1365_v3 }
 0x1f5   : > { %1387 = vmax.xlane.f32.xlu0 %v1386_v61  ;;  %1372 = vmax.xlane.f32.xlu1 %v1371_v14 }
 0x1f9   : > { %1378 = vmax.xlane.f32.xlu1 %v1377_v20  ;;  %v3293_v20 = vsub.s32 %v1517_v1, %v3140_v40 }
 0x1fb   : > { %v1521_v60 = vrot.slane %v3259_v28, %v3293_v20  ;;  %v1531_v17 = vrot.slane %v1352_v32, %v3293_v20  ;;  %v1540_v25 = vrot.slane %v3263_v33, %v3293_v20 }
 0x1fd   : > { %1384 = vmax.xlane.f32.xlu1 %v1383_v22  ;;  %v3296_v22 = vsub.s32 %v1512_v11, %v3140_v40 }
 0x1ff   : > { %v1527_v39 = vrot.slane %v1349_v12, %v3296_v22 }
 0x201   : > { %v3320_v32 = vsel %vm1522_vm12, %v1531_v17, %v1527_v39 }
 0x20b   : > { %346 = vperm.xlu0 %2588, %v336_v15  }
 0x20e   : > { %341 = vperm.xlu1 %2589, %v335_v36  }
 0x242   : > { %v1170_v37 = vpop.xlane.xlu0 %1169 }
 0x243   : > { %v1214_v44 = vmul.f32 0.015873017, %v1170_v37 }
 0x245   : > { %2590 = vrsqrt.f32 %v1214_v44  ;;  %vm1238_vm11 = vcmp.eq.f32.partialorder %v1214_v44, inf  ;;  %v1241_v36 = vand.u32 2147483648, %v1214_v44  ;;  %vm1240_vm13 = vcmp.eq.f32.partialorder %v1214_v44, 0.0 }
 0x246   : > { %v1188_v43 = vpop.xlane.xlu0 %1187 }
 0x247   : > { %v3267_v46 = vmul.f32 0.015873017, %v1188_v43  ;;  %v1536_v43 = vrot.slane %v3265_v34, %v3296_v22 }
 0x249   : > { %2592 = vrsqrt.f32 %v3267_v46  ;;  %vm1280_vm14 = vcmp.eq.f32.partialorder %v3267_v46, inf  ;;  %vm1282_vm15 = vcmp.eq.f32.partialorder %v3267_v46, 0.0  ;;  %v3447_v28 = vsel %vm1522_vm12, %v1540_v25, %v1536_v43 }
 0x24a   : > { %v1167_v41 = vpop.xlane.xlu1 %1166 }
 0x24b   : > { %v3269_v50 = vmul.f32 0.015873017, %v1167_v41  ;;  %v1516_v41 = vrot.slane %v3261_v30, %v3296_v22 }
 0x24d   : > { %2594 = vrsqrt.f32 %v3269_v50  ;;  %vm1231_vm2 = vcmp.eq.f32.partialorder %v3269_v50, inf  ;;  %vm1233_vm10 = vcmp.eq.f32.partialorder %v3269_v50, 0.0 }
 0x24e   : > { %v1185_v19 = vpop.xlane.xlu1 %1184 }
 0x24f   : > { %v3276_v49 = vmul.f32 0.015873017, %v1185_v19  ;;  %v2591_v0 = vpop.eup %2590 }
 0x250   : > { %v1237_v3 = vmul.f32 %v2591_v0, %v1214_v44 }
 0x252   : > { %v1176_v45 = vpop.xlane.xlu0 %1175  ;;  %v1173_v47 = vpop.xlane.xlu1 %1172  ;;  %v1239_v15 = vsel %vm1238_vm11, %v1214_v44, %v1237_v3  ;;  %v1283_v44 = vand.u32 2147483648, %v3267_v46  ;;  %vm1273_vm11 = vcmp.eq.f32.partialorder %v3276_v49, inf }
 0x253   : > { %v3271_v27 = vmul.f32 0.015873017, %v1176_v45  ;;  %v3274_v62 = vmul.f32 0.015873017, %v1173_v47  ;;  %v2593_v8 = vpop.eup %2592  ;;  %v3324_v19 = vsel %vm1240_vm13, %v1241_v36, %v1239_v15  ;;  %v1234_v47 = vand.u32 2147483648, %v3269_v50 }
 0x254   : > { %v1279_v55 = vmul.f32 %v2593_v8, %v3267_v46  ;;  %vm1275_vm13 = vcmp.eq.f32.partialorder %v3276_v49, 0.0  ;;  %v3682_v30 = vrot.slane %v3324_v19, %v3309_v35 }
 0x255   : > { %2596 = vrsqrt.f32 %v3271_v27  ;;  %vm1252_vm1 = vcmp.eq.f32.partialorder %v3271_v27, inf  ;;  %vm1254_vm0 = vcmp.eq.f32.partialorder %v3271_v27, 0.0  ;;  %v1255_v39 = vand.u32 2147483648, %v3271_v27 }
 0x256   : > { %v1200_v51 = vpop.xlane.xlu0 %1199  ;;  %v1197_v54 = vpop.xlane.xlu1 %1196  ;;  %2598 = vrsqrt.f32 %v3274_v62  ;;  %v1281_v0 = vsel %vm1280_vm14, %v3267_v46, %v1279_v55  ;;  %vm1245_vm14 = vcmp.eq.f32.partialorder %v3274_v62, inf  ;;  %vm1247_vm9 = vcmp.eq.f32.partialorder %v3274_v62, 0.0 }
 0x257   : > { %v3283_v13 = vmul.f32 0.015873017, %v1200_v51  ;;  %2600 = vrsqrt.f32 %v3276_v49  ;;  %v3288_v61 = vmul.f32 0.015873017, %v1197_v54  ;;  %v2595_v18 = vpop.eup %2594  ;;  %v1276_v51 = vand.u32 2147483648, %v3276_v49 }
 0x258   : > { %v1230_v1 = vmul.f32 %v2595_v18, %v3269_v50  ;;  %v3353_v17 = vsel %vm1282_vm15, %v1283_v44, %v1281_v0  ;;  %vm1621_vm15 = vcmask 392512  }
 0x259   : > { %2602 = vrsqrt.f32 %v3283_v13  ;;  %vm1308_vm8 = vcmp.eq.f32.partialorder %v3283_v13, inf  ;;  %vm1301_vm7 = vcmp.eq.f32.partialorder %v3288_v61, inf }
 0x25a   : > { %v1182_v63 = vpop.xlane.xlu0 %1181 }
 0x25b   : > { %v3286_v31 = vmul.f32 0.015873017, %v1182_v63 }
 0x25e   : > { %v1179_v5 = vpop.xlane.xlu1 %1178 }
 0x25f   : > { %v3290_v14 = vmul.f32 0.015873017, %v1179_v5  ;;  %v2597_v23 = vpop.eup %2596 }
 0x260   : > { %v2599_v37 = vpop.eup %2598  ;;  %v1251_v54 = vmul.f32 %v2597_v23, %v3271_v27  ;;  %v1248_v23 = vand.u32 2147483648, %v3274_v62 }
 0x261   : > { %2604 = vrsqrt.f32 %v3290_v14  ;;  %v2601_v45 = vpop.eup %2600  ;;  %v1244_v11 = vmul.f32 %v2599_v37, %v3274_v62  ;;  %v1232_v37 = vsel %vm1231_vm2, %v3269_v50, %v1230_v1  ;;  %vm1259_vm2 = vcmp.eq.f32.partialorder %v3290_v14, inf }
 0x262   : > { %2606 = vrsqrt.f32 %v3286_v31  ;;  %v1272_v2 = vmul.f32 %v2601_v45, %v3276_v49  ;;  %v1253_v36 = vsel %vm1252_vm1, %v3271_v27, %v1251_v54  ;;  %vm1310_vm1 = vcmp.eq.f32.partialorder %v3283_v13, 0.0 }
 0x263   : > { %2608 = vrsqrt.f32 %v3288_v61  ;;  %v2603_v3 = vpop.eup %2602  ;;  %v1246_v45 = vsel %vm1245_vm14, %v3274_v62, %v1244_v11  ;;  %v1256_v11 = vsel %vm1254_vm0, %v1255_v39, %v1253_v36  ;;  %vm1266_vm0 = vcmp.eq.f32.partialorder %v3286_v31, inf }
 0x264   : > { %v1274_v54 = vsel %vm1273_vm11, %v3276_v49, %v1272_v2  ;;  %v1249_v2 = vsel %vm1247_vm9, %v1248_v23, %v1246_v45  ;;  %v1269_v27 = vand.u32 2147483648, %v3286_v31  ;;  %v1630_v50 = vrot.slane %v1256_v11, %v3309_v35 }
 0x265   : > { %v1277_v62 = vsel %vm1275_vm13, %v1276_v51, %v1274_v54  ;;  %vm1261_vm9 = vcmp.eq.f32.partialorder %v3290_v14, 0.0 }
 0x266   : > { %v1212_v12 = vpop.xlane.xlu0 %1211 }
 0x267   : > { %v3349_v15 = vmul.f32 0.015873017, %v1212_v12 }
 0x269   : > { %v1339_v43 = vand.u32 2147483648, %v3349_v15 }
 0x26a   : > { %v1194_v5 = vpop.xlane.xlu0 %1193 }
 0x26b   : > { %v3344_v6 = vmul.f32 0.015873017, %v1194_v5  ;;  %v2605_v8 = vpop.eup %2604 }
 0x26c   : > { %v2607_v18 = vpop.eup %2606  ;;  %v1258_v12 = vmul.f32 %v2605_v8, %v3290_v14  ;;  %v1307_v8 = vmul.f32 %v2603_v3, %v3283_v13  ;;  %v1262_v3 = vand.u32 2147483648, %v3290_v14 }
 0x26d   : > { %2610 = vrsqrt.f32 %v3344_v6  ;;  %v2609_v55 = vpop.eup %2608  ;;  %v1265_v5 = vmul.f32 %v2607_v18, %v3286_v31  ;;  %vm1294_vm11 = vcmp.eq.f32.partialorder %v3344_v6, inf  ;;  %vm1296_vm13 = vcmp.eq.f32.partialorder %v3344_v6, 0.0 }
 0x26e   : > { %v1206_v46 = vpop.xlane.xlu0 %1205  ;;  %v1209_v44 = vpop.xlane.xlu1 %1208  ;;  %2612 = vrsqrt.f32 %v3349_v15  ;;  %v1300_v63 = vmul.f32 %v2609_v55, %v3288_v61  ;;  %v1260_v39 = vsel %vm1259_vm2, %v3290_v14, %v1258_v12  ;;  %v1311_v12 = vand.u32 2147483648, %v3283_v13 }
 0x26f   : > { %v3369_v0 = vmul.f32 0.015873017, %v1206_v46  ;;  %v3371_v1 = vmul.f32 0.015873017, %v1209_v44  ;;  %v1235_v46 = vsel %vm1233_vm10, %v1234_v47, %v1232_v37  ;;  %v1626_v47 = vrot.slane %v1249_v2, %v3315_v16 }
 0x270   : > { %v1267_v55 = vsel %vm1266_vm0, %v3286_v31, %v1265_v5  ;;  %v1309_v37 = vsel %vm1308_vm8, %v3283_v13, %v1307_v8  ;;  %v1302_v49 = vsel %vm1301_vm7, %v3288_v61, %v1300_v63  ;;  %v1263_v51 = vsel %vm1261_vm9, %v1262_v3, %v1260_v39 }
 0x271   : > { %2614 = vrsqrt.f32 %v3369_v0  ;;  %v1615_v45 = vrot.slane %v1235_v46, %v3315_v16  ;;  %v1304_v44 = vand.u32 2147483648, %v3288_v61  ;;  %vm1268_vm10 = vcmp.eq.f32.partialorder %v3286_v31, 0.0 }
 0x272   : > { %v3388_v18 = vpop.xlane.xlu0 %1363  ;;  %v1191_v36 = vpop.xlane.xlu1 %1190  ;;  %2616 = vrsqrt.f32 %v3371_v1  ;;  %v1644_v5 = vrot.slane %v1277_v62, %v3315_v16  ;;  %vm1303_vm8 = vcmp.eq.f32.partialorder %v3288_v61, 0.0  ;;  %v1270_v63 = vsel %vm1268_vm10, %v1269_v27, %v1267_v55 }
 0x273   : > { %v3394_v23 = vmul.f32 0.015873017, %v1191_v36  ;;  %v1631_v8 = vsel %vm1621_vm15, %v1630_v50, %v1626_v47  ;;  %v3420_v46 = vsel %vm1310_vm1, %v1311_v12, %v1309_v37  ;;  %v3422_v39 = vsel %vm1303_vm8, %v1304_v44, %v1302_v49 }
 0x274   : > { %v1635_v31 = vrot.slane %v1263_v51, %v3315_v16  ;;  %v1523_v61 = vsel %vm1522_vm12, %v1521_v60, %v1516_v41  ;;  %v1648_v27 = vrot.slane %v3353_v17, %v3309_v35  ;;  %v1622_v60 = vsel %vm1621_vm15, %v3682_v30, %v1615_v45 }
 0x275   : > { %2618 = vrsqrt.f32 %v3394_v23  ;;  %v3438_v62 = vsel %vm1481_vm3, %v3320_v32, %v1523_v61  ;;  %v1639_v41 = vrot.slane %v1270_v63, %v3309_v35  ;;  %v1666_v32 = vrot.slane %v3420_v46, %v3309_v35 }
 0x276   : > { %v3411_v14 = vpop.xlane.xlu0 %1369  ;;  %v1203_v54 = vpop.xlane.xlu1 %1202  ;;  %v1662_v34 = vrot.slane %v3422_v39, %v3315_v16  ;;  %v1649_v33 = vsel %vm1621_vm15, %v1648_v27, %v1644_v5  ;;  %v1686_v25 = vsel %vm1481_vm3, %v1631_v8, %v1622_v60  ;;  %vm1336_vm7 = vcmp.eq.f32.partialorder %v3349_v15, inf }
 0x277   : > { %v2611_v11 = vpop.eup %2610  ;;  %v3415_v2 = vmul.f32 0.015873017, %v1203_v54  ;;  %v1640_v50 = vsel %vm1621_vm15, %v1639_v41, %v1635_v31  ;;  %v1297_v49 = vand.u32 2147483648, %v3344_v6  ;;  %vm1322_vm3 = vcmp.eq.f32.partialorder %v3369_v0, inf }
 0x278   : > { %v1293_v36 = vmul.f32 %v2611_v11, %v3344_v6  ;;  %v2613_v13 = vpop.eup %2612  ;;  %vm1324_vm14 = vcmp.eq.f32.partialorder %v3369_v0, 0.0  ;;  %v1325_v45 = vand.u32 2147483648, %v3369_v0  ;;  %vm1329_vm1 = vcmp.eq.f32.partialorder %v3371_v1, inf }
 0x279   : > { %2620 = vrsqrt.f32 %v3415_v2  ;;  %v1335_v55 = vmul.f32 %v2613_v13, %v3349_v15  ;;  %vm1331_vm2 = vcmp.eq.f32.partialorder %v3371_v1, 0.0  ;;  %v1332_v54 = vand.u32 2147483648, %v3371_v1 }
 0x27a   : > { %v1361_v17 = vpop.xlane.xlu1 %1360  ;;  %v1376_v19 = vpop.xlane.xlu0 %1375  ;;  %v1295_v37 = vsel %vm1294_vm11, %v3344_v6, %v1293_v36  ;;  %v1687_v11 = vsel %vm1483_vm4, %v1640_v50, %v1686_v25  ;;  %vm1338_vm0 = vcmp.eq.f32.partialorder %v3349_v15, 0.0  ;;  %v1549_v63 = vrot.slane %v3388_v18, %v3293_v20 }
 0x27b   : > { %v2615_v3 = vpop.eup %2614  ;;  %v1298_v6 = vsel %vm1296_vm13, %v1297_v49, %v1295_v37  ;;  %v1337_v31 = vsel %vm1336_vm7, %v3349_v15, %v1335_v55  ;;  %vm1287_vm9 = vcmp.eq.f32.partialorder %v3394_v23, inf  ;;  %vm1289_vm10 = vcmp.eq.f32.partialorder %v3394_v23, 0.0 }
 0x27c   : > { %v2617_v47 = vpop.eup %2616  ;;  %v1321_v51 = vmul.f32 %v2615_v3, %v3369_v0  ;;  %v1290_v61 = vand.u32 2147483648, %v3394_v23  ;;  %v1545_v18 = vrot.slane %v1361_v17, %v3296_v22  ;;  %v1688_v60 = vsel %vm1485_vm5, %v1649_v33, %v1687_v11 }
 0x27d   : > { %v1328_v5 = vmul.f32 %v2617_v47, %v3371_v1  ;;  %v1657_v3 = vrot.slane %v1298_v6, %v3309_v35  ;;  %v1558_v50 = vrot.slane %v3411_v14, %v3293_v20  ;;  %vm1315_vm8 = vcmp.eq.f32.partialorder %v3415_v2, inf }
 0x27e   : > { %v1367_v12 = vpop.xlane.xlu1 %1366  ;;  %v1323_v27 = vsel %vm1322_vm3, %v3369_v0, %v1321_v51  ;;  %v1382_v13 = vpop.xlane.xlu0 %1381  ;;  %vm1317_vm7 = vcmp.eq.f32.partialorder %v3415_v2, 0.0  ;;  %v1318_v33 = vand.u32 2147483648, %v3415_v2  ;;  %v1567_v51 = vrot.slane %v1376_v19, %v3293_v20 }
 0x27f   : > { %v2619_v44 = vpop.eup %2618  ;;  %v1330_v47 = vsel %vm1329_vm1, %v3371_v1, %v1328_v5  ;;  %v1554_v55 = vrot.slane %v1367_v12, %v3296_v22  ;;  %v1326_v14 = vsel %vm1324_vm14, %v1325_v45, %v1323_v27  ;;  %v1576_v12 = vrot.slane %v1382_v13, %v3293_v20 }
 0x280   : > { %v1286_v8 = vmul.f32 %v2619_v44, %v3394_v23  ;;  %v1550_v44 = vsel %vm1522_vm12, %v1549_v63, %v1545_v18  ;;  %v1675_v19 = vrot.slane %v1326_v14, %v3309_v35  ;;  %v1588_v27 = vsel %vm1483_vm4, %v3447_v28, %v3438_v62 }
 0x281   : > { %v1559_v0 = vsel %vm1522_vm12, %v1558_v50, %v1554_v55  ;;  %v1340_v1 = vsel %vm1338_vm0, %v1339_v43, %v1337_v31  ;;  %v1589_v18 = vsel %vm1485_vm5, %v1550_v44, %v1588_v27  ;;  %vm3683_vm4 = vcmask 1045509  }
 0x282   : > { %v1288_v36 = vsel %vm1287_vm9, %v3394_v23, %v1286_v8  ;;  %v1373_v30 = vpop.xlane.xlu1 %1372  ;;  %v1388_v45 = vpop.xlane.xlu0 %1387  ;;  %v1590_v15 = vsel %vm1487_vm6, %v1559_v0, %v1589_v18  ;;  %vm3684_vm11 = vmmov %vm3683_vm4  ;;  %vm1694_vm13 = vcmask 130048   ;;  %vm3685_vm5 = vcmask 1046534   ;;  %v1904_v18 = vld [vmem:[%s3668_s5] sm:$0xff] }
 0x283   : > { %v2621_v41 = vpop.eup %2620  ;;  %v1291_v25 = vsel %vm1289_vm10, %v1290_v61, %v1288_v36  ;;  %v1563_v37 = vrot.slane %v1373_v30, %v3296_v22  ;;  %v1333_v61 = vsel %vm1331_vm2, %v1332_v54, %v1330_v47  ;;  %v1667_v54 = vsel %vm1621_vm15, %v1666_v32, %v1662_v34  ;;  %vm3686_vm3 = vmmov %vm3685_vm5  ;;  %2422 = vmatprep.mubr.f32.mxu1 %v1904_v18 }
 0x284   : > { %v1653_v23 = vrot.slane %v1291_v25, %v3315_v16  ;;  %v1314_v17 = vmul.f32 %v2621_v41, %v3415_v2  ;;  %v1680_v30 = vrot.slane %v1333_v61, %v3315_v16  ;;  %v1585_v43 = vrot.slane %v1388_v45, %v3293_v20 }
 0x285   : > { %v1568_v36 = vsel %vm1522_vm12, %v1567_v51, %v1563_v37  ;;  %v1684_v32 = vrot.slane %v1340_v1, %v3309_v35  ;;  %vm3687_vm14 = vcmask 1047559   ;;  %vm3689_vm2 = vcmask 261120   ;;  %v2164_v35 = vld [vmem:[%s3667_s4] ss:$0 sm:$0xff] }
 0x286   : > { %v1316_v49 = vsel %vm1315_vm8, %v3415_v2, %v1314_v17  ;;  %v1379_v11 = vpop.xlane.xlu1 %1378  ;;  %v1658_v6 = vsel %vm1621_vm15, %v1657_v3, %v1653_v23  ;;  %v1591_v46 = vsel %vm3684_vm11, %v1568_v36, %v1590_v15  ;;  %vm3688_vm1 = vmmov %vm3687_vm14  ;;  %v1797_v50 = vsub.s32 1, %v3140_v40 }
 0x287   : > { %v1572_v5 = vrot.slane %v1379_v11, %v3296_v22  ;;  %v1319_v8 = vsel %vm1317_vm7, %v1318_v33, %v1316_v49  ;;  %v1689_v63 = vsel %vm1487_vm6, %v1658_v6, %v1688_v60  ;;  %v1685_v3 = vsel %vm1621_vm15, %v1684_v32, %v1680_v30 }
 0x288   : > { %v1671_v2 = vrot.slane %v1319_v8, %v3315_v16  ;;  %v1690_v31 = vsel %vm3683_vm4, %v1667_v54, %v1689_v63  ;;  %vm1710_vm6 = vcmask 392192   ;;  %v1786_v47 = vsub.s32 0, %v3140_v40 }
 0x289   : > { %v1577_v13 = vsel %vm1522_vm12, %v1576_v12, %v1572_v5  ;;  %v1819_v49 = vsub.s32 3, %v3140_v40  ;;  %v1830_v44 = vsub.s32 4, %v3140_v40  ;;  %v2727_v11 = vmov 1966171168  }
 0x28a   : > { %v1385_v62 = vpop.xlane.xlu1 %1384  ;;  %v1676_v28 = vsel %vm1621_vm15, %v1675_v19, %v1671_v2  ;;  %v1592_v60 = vsel %vm3686_vm3, %v1577_v13, %v1591_v46  ;;  %v1992_v6 = vunpack.c.l.s4 %v2727_v11  ;;  %v1841_v5 = vsub.s32 5, %v3140_v40  ;;  %v2166_v2 = vld.sshfl [vmem:[%s3669_s6] sm:$0x11 pattern:$0x75316420] }
 0x28b   : > { %v1581_v39 = vrot.slane %v1385_v62, %v3296_v22  ;;  %v1691_v34 = vsel %vm3685_vm5, %v1676_v28, %v1690_v31  ;;  %v1852_v0 = vsub.s32 6, %v3140_v40  ;;  %v1863_v63 = vsub.s32 7, %v3140_v40  ;;  %v3571_v62 = vpop.permute.xlu0 %346 }
 0x28c   : > { %v1692_v22 = vsel %vm3688_vm1, %v1685_v3, %v1691_v34  ;;  %v1993_v8 = vunpack.c.0.s8 %v1992_v6  ;;  %v1990_v54 = vcombine.high %v2166_v2, %v2166_v2  ;;  %v444_v31 = vadd.f32 %v3012_v56, %v3571_v62 }
 0x28d   : > { %v1586_v41 = vsel %vm1522_vm12, %v1585_v43, %v1581_v39  ;;  %vm2029_vm12 = vcmask 531968   ;;  %vm3690_vm15 = vcmask 523264  }
 0x28e   : > { %v1593_v16 = vsel %vm3687_vm14, %v1586_v41, %v1592_v60  ;;  %v1996_v45 = vsub.s32 %v1993_v8, %v3140_v40  ;;  %v3573_v28 = vpop.permute.xlu1 %341  ;;  %v784_v8 = vadd.f32 %v3072_v38, %v3571_v62  ;;  %vm3691_vm0 = vmmov %vm3690_vm15 }
 0x28f   : > { %v1695_v20 = vsel %vm1694_vm13, %v3208_v53, %v1593_v16  ;;  %v1808_v53 = vsub.s32 2, %v3140_v40  ;;  %v439_v43 = vadd.f32 %v3014_v57, %v3573_v28  ;;  %v524_v34 = vadd.f32 %v3035_v9, %v3573_v28 }
 0x290   : > { %v1696_v25 = vsel %vm3689_vm2, %v1695_v20, %v1692_v22  ;;  %v1997_v27 = vrot.slane %v2166_v2, %v1996_v45  ;;  %v2004_v13 = vrot.slane %v1990_v54, %v1996_v45  ;;  %v529_v20 = vadd.f32 %v3026_v4, %v3571_v62 }
 0x291   : > { %2388 = vmatmul.mubr.msk.f32.vlgmr.msra.gmra.mrb[20].mxu0 %vm1710_vm6, %v1696_v25  ;;  %v609_v57 = vadd.f32 %v3057_v26, %v3573_v28  ;;  %v614_v9 = vadd.f32 %v3048_v21, %v3571_v62  ;;  %v694_v4 = vadd.f32 %v3018_v59, %v3573_v28  ;;  %v779_v21 = vadd.f32 %v3079_v42, %v3573_v28 }
 0x292   : > { %v2008_v1 = vrot.slane %v1997_v27, %v1786_v47  ;;  %v2012_v40 = vrot.slane %v2004_v13, %v1786_v47  ;;  %v869_v27 = vadd.f32 %v3031_v7, %v3571_v62  ;;  %v949_v38 = vadd.f32 %v3093_v52, %v3573_v28 }
 0x293   : > { %v1034_v7 = vadd.f32 %v3063_v29, %v3573_v28 }
 0x364   : > { %v1780_v23 = vpop.f32.mrb[20].mxu0 }
 0x365   : > { %v1781_v17 = vadd.f32 %v2164_v35, %v1780_v23  ;;  %v2389_v55 = vpop.f32.mrb[21].mxu0 }
 0x367   : > { %v1798_v33 = vrot.slane %v1781_v17, %v1797_v50  ;;  %v1787_v37 = vrot.slane %v1781_v17, %v1786_v47  ;;  %v1809_v14 = vrot.slane %v1781_v17, %v1808_v53  ;;  %v1820_v51 = vrot.slane %v1781_v17, %v1819_v49 }
 0x368   : > { %v1831_v12 = vrot.slane %v1781_v17, %v1830_v44  ;;  %v1842_v61 = vrot.slane %v1781_v17, %v1841_v5  ;;  %v1853_v19 = vrot.slane %v1781_v17, %v1852_v0  ;;  %v1864_v36 = vrot.slane %v1781_v17, %v1863_v63 }
 0x369   : > { %1800 = vbcast.lane.b32.xlu0 %v1798_v33, 256  ;;  %1789 = vbcast.lane.b32.xlu1 %v1787_v37, 256  ;;  %v699_v49 = vadd.f32 %v3016_v58, %v3571_v62  ;;  %v864_v58 = vadd.f32 %v3037_v10, %v3573_v28  ;;  %v1905_v28 = vld [vmem:[%s3668_s5 + $0x8] sm:$0xff] }
 0x36d   : > { %1811 = vbcast.lane.b32.xlu0 %v1809_v14, 256  ;;  %1793 = vbcast.lane.b32.xlu1 %v1787_v37, 264 }
 0x371   : > { %1822 = vbcast.lane.b32.xlu0 %v1820_v51, 256  ;;  %1804 = vbcast.lane.b32.xlu1 %v1798_v33, 264 }
 0x375   : > { %1833 = vbcast.lane.b32.xlu0 %v1831_v12, 256  ;;  %1815 = vbcast.lane.b32.xlu1 %v1809_v14, 264 }
 0x379   : > { %1844 = vbcast.lane.b32.xlu0 %v1842_v61, 256  ;;  %1826 = vbcast.lane.b32.xlu1 %v1820_v51, 264 }
 0x37d   : > { %1855 = vbcast.lane.b32.xlu0 %v1853_v19, 256  ;;  %1837 = vbcast.lane.b32.xlu1 %v1831_v12, 264 }
 0x381   : > { %1866 = vbcast.lane.b32.xlu0 %v1864_v36, 256  ;;  %1848 = vbcast.lane.b32.xlu1 %v1842_v61, 264 }
 0x385   : > { %2014 = vperm.xlu0 %2588, %v2008_v1   ;;  %1859 = vbcast.lane.b32.xlu1 %v1853_v19, 264 }
 0x389   : > { %2026 = vrot.lane.b32.xlu0 %v1781_v17, %s2728_s8  ;;  %1870 = vbcast.lane.b32.xlu1 %v1864_v36, 264  ;;  %s2656_s8 = sshll.u32 %s2730_s9, 4  ;;  %s2657_s8 = int_to_ptr.vmem [resolvable:$false] %s2656_s8 }
 0x38a   : > { %p2659_p8 = scmp.lt.s32.totalorder %s3617_s22, %s2657_s8 }
 0x38d   : > { %2018 = vperm.xlu1 %2589, %v2012_v40   ;;  %v954_v40 = vadd.f32 %v3086_v48, %v3571_v62 }
 0x391   : > { %2031 = vrot.lane.b32.xlu1 %v1781_v17, %s2729_s11  ;;  %s2658_s11 = scalar_lea.vmem %s2657_s8, 512 }
 0x392   : > { %p2660_p10 = scmp.lt.s32.totalorder %s2658_s11, %s2652_s21 }
 0x394   : > { %p2661_p0 = por %p2660_p10, %p2659_p8 }
 0x396   : > { %p2662_p2 = pnand %p2661_p0, %p2655_p13 }
 0x3db   : > { %v1801_v30 = vpop.permute.xlu0 %1800  ;;  %v1790_v15 = vpop.permute.xlu1 %1789 }
 0x3dc   : > { %v1872_v39 = vadd.f32 %v1790_v15, %v439_v43  ;;  %v1874_v41 = vadd.f32 %v1801_v30, %v524_v34 }
 0x3de   : > { %v1888_v16 = vmax.f32 %v1872_v39, 0.0  ;;  %v1890_v56 = vmax.f32 %v1874_v41, 0.0 }
 0x3df   : > { %v1812_v46 = vpop.permute.xlu0 %1811  ;;  %v1794_v32 = vpop.permute.xlu1 %1793 }
 0x3e0   : > { %v1873_v60 = vadd.f32 %v1794_v32, %v444_v31  ;;  %v1876_v47 = vadd.f32 %v1812_v46, %v609_v57  ;;  %v1039_v32 = vadd.f32 %v3053_v24, %v3571_v62 }
 0x3e2   : > { %v1889_v3 = vmax.f32 %v1873_v60, 0.0  ;;  %v1892_v53 = vmax.f32 %v1876_v47, 0.0 }
 0x3e3   : > { %v1823_v22 = vpop.permute.xlu0 %1822  ;;  %v1805_v25 = vpop.permute.xlu1 %1804 }
 0x3e4   : > { %v2498_v35 = vpack.c.bf16 %v1889_v3, %v1888_v16  ;;  %v1875_v50 = vadd.f32 %v1805_v25, %v529_v20  ;;  %v1878_v14 = vadd.f32 %v1823_v22, %v694_v4 }
 0x3e6   : > { %v1891_v23 = vmax.f32 %v1875_v50, 0.0  ;;  %2499 = vmatprep.subr.bf16.mxu1 %v2498_v35  ;;  %v1894_v12 = vmax.f32 %v1878_v14, 0.0 }
 0x3e7   : > { %v1834_v17 = vpop.permute.xlu0 %1833  ;;  %2501 = vmatpush3.bf16.msra.mxu1 %v2498_v35  ;;  %v1816_v55 = vpop.permute.xlu1 %1815 }
 0x3e8   : > { %v2502_v33 = vpack.c.bf16 %v1891_v23, %v1890_v56  ;;  %v1877_v37 = vadd.f32 %v1816_v55, %v614_v9  ;;  %v1880_v5 = vadd.f32 %v1834_v17, %v779_v21 }
 0x3ea   : > { %v1893_v26 = vmax.f32 %v1877_v37, 0.0  ;;  %2503 = vmatprep.subr.bf16.mxu1 %v2502_v33  ;;  %v1896_v19 = vmax.f32 %v1880_v5, 0.0 }
 0x3eb   : > { %v1845_v51 = vpop.permute.xlu0 %1844  ;;  %2505 = vmatpush3.bf16.msra.mxu1 %v2502_v33  ;;  %v1827_v44 = vpop.permute.xlu1 %1826 }
 0x3ec   : > { %v2506_v11 = vpack.c.bf16 %v1893_v26, %v1892_v53  ;;  %v1879_v6 = vadd.f32 %v1827_v44, %v699_v49  ;;  %v1882_v63 = vadd.f32 %v1845_v51, %v864_v58 }
 0x3ee   : > { %v1895_v59 = vmax.f32 %v1879_v6, 0.0  ;;  %2507 = vmatprep.subr.bf16.mxu1 %v2506_v11  ;;  %v1898_v18 = vmax.f32 %v1882_v63, 0.0 }
 0x3ef   : > { %2509 = vmatpush3.bf16.msra.mxu1 %v2506_v11  ;;  %v1838_v61 = vpop.permute.xlu1 %1837  ;;  %v1856_v2 = vpop.permute.xlu0 %1855 }
 0x3f0   : > { %v2510_v0 = vpack.c.bf16 %v1895_v59, %v1894_v12  ;;  %v1881_v45 = vadd.f32 %v1838_v61, %v784_v8  ;;  %v1884_v13 = vadd.f32 %v1856_v2, %v949_v38 }
 0x3f2   : > { %v1897_v42 = vmax.f32 %v1881_v45, 0.0  ;;  %2511 = vmatprep.subr.bf16.mxu1 %v2510_v0  ;;  %v1900_v31 = vmax.f32 %v1884_v13, 0.0 }
 0x3f3   : > { %2513 = vmatpush3.bf16.msra.mxu1 %v2510_v0  ;;  %v1849_v36 = vpop.permute.xlu1 %1848  ;;  %v1867_v30 = vpop.permute.xlu0 %1866 }
 0x3f4   : > { %v2514_v1 = vpack.c.bf16 %v1897_v42, %v1896_v19  ;;  %v1883_v54 = vadd.f32 %v1849_v36, %v869_v27  ;;  %v1886_v46 = vadd.f32 %v1867_v30, %v1034_v7 }
 0x3f6   : > { %v1899_v10 = vmax.f32 %v1883_v54, 0.0  ;;  %2515 = vmatprep.subr.bf16.mxu1 %v2514_v1  ;;  %v1902_v41 = vmax.f32 %v1886_v46, 0.0 }
 0x3f7   : > { %2517 = vmatpush3.bf16.msra.mxu1 %v2514_v1  ;;  %v1860_v15 = vpop.permute.xlu1 %1859 }
 0x3f8   : > { %v2518_v43 = vpack.c.bf16 %v1899_v10, %v1898_v18  ;;  %v1885_v39 = vadd.f32 %v1860_v15, %v954_v40 }
 0x3fa   : > { %v1901_v52 = vmax.f32 %v1885_v39, 0.0  ;;  %2519 = vmatprep.subr.bf16.mxu1 %v2518_v43 }
 0x3fb   : > { %2521 = vmatpush3.bf16.msra.mxu1 %v2518_v43  ;;  %v1871_v34 = vpop.permute.xlu1 %1870 }
 0x3fc   : > { %v2522_v48 = vpack.c.bf16 %v1901_v52, %v1900_v31  ;;  %v1887_v60 = vadd.f32 %v1871_v34, %v1039_v32 }
 0x3fe   : > { %v1903_v16 = vmax.f32 %v1887_v60, 0.0  ;;  %2523 = vmatprep.subr.bf16.mxu1 %v2522_v48 }
 0x3ff   : > { %2525 = vmatpush3.bf16.msra.mxu1 %v2522_v48 }
 0x400   : > { %v2526_v29 = vpack.c.bf16 %v1903_v16, %v1902_v41 }
 0x402   : > { %2527 = vmatprep.subr.bf16.mxu1 %v2526_v29 }
 0x403   : > { %2529 = vmatpush3.bf16.msra.mxu1 %v2526_v29 }
 0x404   : > { %v2015_v24 = vpop.permute.xlu0 %2014 }
 0x406   : > { %2423 = vmatmul.mubr.f32.vlgmr.msra.gmra.mrb[12].mxu1 %v1905_v28 }
 0x408   : > { %v2027_v35 = vpop.permute.xlu0 %2026 }
 0x40c   : > { %v2019_v3 = vpop.permute.xlu1 %2018 }
 0x410   : > { %v2032_v57 = vpop.permute.xlu1 %2031 }
 0x4d9   : > { %v2424_v62 = vpop.f32.mrb[12].mxu1 }
 0x4da   : > { %v2022_v20 = vadd.f32 %v2424_v62, %v2019_v3  ;;  %v1972_v22 = vpop.f32.mrb[13].mxu1 }
 0x4db   : > { %v2021_v25 = vadd.f32 %v2015_v24, %v1972_v22 }
 0x4dc   : > { %2024 = vst.msk [vmem:[%s297_s20 + $0x8] sm:$0xff] %vm3690_vm15, %v2022_v20 }
 0x4dd   : > { %2167 = vst.msk [vmem:[%s297_s20 + $0x8] sm:$0xff] %vm2029_vm12, %v2032_v57 }
 0x4de   : > { %2023 = vst.msk [vmem:[%s297_s20] sm:$0xff] %vm3691_vm0, %v2021_v25 }
 0x4df   : > { %2030 = vst.msk [vmem:[%s297_s20] sm:$0xff] %vm2029_vm12, %v2027_v35 }
 0x4e0   : > { %2665 = shalt.err (!%p2662_p2)
}
 0x4e1   : > { %s2666_s17 = scalar_lea.hbm %s3615_s19, 256  ;;  %s2670_s12 = scalar_lea.hbm %s3670_s7, 512 }
 0x4e2   : > { %p2667_p4 = scmp.ne.s32.totalorder %s3615_s19, %s2666_s17  ;;  %p2671_p9 = scmp.lt.u32.totalorder %s3615_s19, %s3670_s7 }
 0x4e3   : > { %p2672_p1 = scmp.lt.u32.totalorder %s2670_s12, %s2666_s17  ;;  %p2674_p6 = scmp.lt.u32.totalorder %s2666_s17, %s3615_s19 }
 0x4e4   : > { %p2668_p5 = pnand %p2667_p4, %p3692_p11 }
 0x4e5   : > { %p2673_p3 = por %p2672_p1, %p2671_p9 }
 0x4e6   : > { %p2669_p7 = pneg %p2668_p5 }
 0x4e7   : > { %p2675_p12 = por %p2674_p6, %p2673_p3 }
 0x4e9   : > { %p2676_p13 = pnand %p2675_p12, %p2669_p7 }
 0x4eb   : > { %2679 = shalt.err (!%p2676_p13)
}
 0x4ec   : > { %s2731_s29 = smov 128   ;;  %s2732_s21 = smov 256  }
 0x4ed   : > { %s2733_s9 = smov 8  }
 0x4ee   : > { %2532 = dma.vmem_to_hbm [thread:$0]  (%p3692_p11), %s3617_s22, 256, %s3615_s19, %s2037_s28, %s2731_s29, %s2732_s21, %s2733_s9  }
 0x4ef PF: > { %s2064_s8 = sand.u32 1, %s2706_s24   ;;  %p3693_p8 = scmp.ne.s32.totalorder %s3680_s14, 0 }
 0x4f0   : > { %p3694_p10 = scmp.ge.s32.totalorder %s2718_s27, 2  ;;  %s2065_s11 = scalar_lea.sflag [#allocation4], %s2064_s8 }
 0x4f2   : > { %p2539_p0 = pnand %p3694_p10, %p3693_p8 }
 0x4f4   : > { %2701 = dma.done.wait (!%p2539_p0), %s2065_s11, 256  }
 0x4f5   : > { %2703 = vsyncadd (!%p2539_p0), %s2065_s11, 4294967040  ;;  %p20_p2 = scmp.ge.s32.totalorder %s2799_s30, 4   ;;  %s3695_s24 = smov %s2710_s25 }
 0x4f6   : > { %s3696_s25 = smov %s2714_s26  ;;  %s3697_s26 = smov %s2811_s10 }
 0x4f7   : > { %s3698_s27 = smov %s2799_s30  ;;  %22 = sbr.rel (!%p20_p2) target bundleno = 5 (0x5), region = 94 }
 0x4fe   :  { %2070 = vsyncpa [#allocation3], 1 }
 0x4ff   :  { %2072 = vsyncpa [#allocation3 + $0x1], 1 }
 0x500   :  { %2073 = vsyncpa [#allocation4], 1 }
 0x501   :  { %2075 = vsyncpa [#allocation4 + $0x1], 1 }

</bundles_post_ra>
